<compile_context>
chip_gen: v7x
topology: tpu7x:2x2x1
jax: 0.10.0
libtpu: 0.0.40
codegen_flags: <defaults>
</compile_context>

<pallas_src>
import functools

import jax
import jax.numpy as jnp
import numpy as np
from jax.experimental import pallas as pl
from jax.experimental.pallas import tpu as pltpu


# ----------------------------------------------------------------------------
# Pallas kernel
# ----------------------------------------------------------------------------
def encoder_kernel(
    x_ref,      # (BT, Tm1*I)        driving series, batch tile, time-major lanes
    wsx_ref,    # (Tm1*I, I)         selection matrix: wsx[t*I+j, j] = attn_w_x[t]
    wbig_ref,   # (Tm1*I, Tm1*4H)    block-diag of W_ih^T (gate order [i,f,o,g])
    bbig_ref,   # (1, Tm1*4H)        (b_ih + b_hh), reordered, tiled over steps
    whh_ref,    # (H, 4H)            W_hh^T, gate order [i,f,o,g]
    xt_ref,     # out: (BT, Tm1*I)   X_tilde
    xe_ref,     # out: (BT, Tm1*H)   X_encoded (hidden states)
):
    BT = x_ref.shape[0]
    I = wsx_ref.shape[1]
    H = whh_ref.shape[0]
    G = 4 * H
    Tm1 = x_ref.shape[1] // I

    x = x_ref[...]                                              # (BT, Tm1*I)

    # ---- input attention (loop-invariant: h/c/bias term cancels in softmax) --
    # score_x[b, j] = sum_t attn_w_x[t] * X[b, t, j]  via one small matmul.
    score = jnp.dot(x, wsx_ref[...], preferred_element_type=jnp.float32)  # (BT, I)
    score = score - jnp.max(score, axis=-1, keepdims=True)
    e = jnp.exp(score)
    alpha = e / jnp.sum(e, axis=-1, keepdims=True)              # (BT, I)

    # X_tilde for all timesteps at once: xt[b, t*I+j] = alpha[b,j] * X[b,t,j].
    alpha_tiled = jnp.concatenate([alpha] * Tm1, axis=1)        # (BT, Tm1*I)
    xt = alpha_tiled * x
    xt_ref[...] = xt                                            # one dense store

    # x-side gate pre-activations for every step in ONE batched matmul
    # (block-diagonal weights keep the step-major lane layout, 4H-aligned).
    pre = (
        jnp.dot(xt, wbig_ref[...], preferred_element_type=jnp.float32)
        + bbig_ref[...]
    )                                                           # (BT, Tm1*4H)

    whh = whh_ref[...]                                          # (H, 4H)

    # ---- LSTM recurrence (short, static trip count; carries live in vregs) --
    h = jnp.zeros((BT, H), jnp.float32)
    c = jnp.zeros((BT, H), jnp.float32)
    hs = []
    for t in range(Tm1):
        gates = pre[:, t * G:(t + 1) * G] + jnp.dot(
            h, whh, preferred_element_type=jnp.float32
        )                                                       # (BT, 4H)
        # Gate order [i, f, o, g]: sigmoid on lanes 0:3H, tanh on 3H:4H.
        sig = jax.nn.sigmoid(gates[:, : 3 * H])
        i_g = sig[:, :H]
        f_g = sig[:, H:2 * H]
        o_g = sig[:, 2 * H:3 * H]
        g_g = jnp.tanh(gates[:, 3 * H:])
        c = f_g * c + i_g * g_g
        h = o_g * jnp.tanh(c)
        hs.append(h)

    xe_ref[...] = jnp.concatenate(hs, axis=1)                   # one dense store


# ----------------------------------------------------------------------------
# Wrapper
# ----------------------------------------------------------------------------
def _reorder_ifgo_to_ifog(m, H):
    """Reorder PyTorch LSTM gate blocks [i, f, g, o] -> [i, f, o, g] (axis 0)."""
    return jnp.concatenate([m[:H], m[H:2 * H], m[3 * H:], m[2 * H:3 * H]], axis=0)


@functools.partial(jax.jit, static_argnames=("encoder_num_hidden",))
def encoder_forward(X, w_ih, w_hh, b_ih, b_hh, attn_w, attn_b, *, encoder_num_hidden):
    """Equivalent of Encoder.forward. X: (B, T-1, input_size) float32."""
    B, Tm1, I = X.shape
    H = encoder_num_hidden
    BT = 8                                       # batch tile (sublane count)
    BP = ((B + BT - 1) // BT) * BT               # sublane-pad batch

    # Lane-dense input slab, no transpose: x_flat[b, t*I + j] = X[b, t, j].
    x_flat = X.reshape(B, Tm1 * I).astype(jnp.float32)
    x_flat = jnp.pad(x_flat, ((0, BP - B), (0, 0)))

    # Gate weights, reordered to [i, f, o, g] and transposed.
    w_ihT = _reorder_ifgo_to_ifog(w_ih.astype(jnp.float32), H).T     # (I, 4H)
    w_hhT = _reorder_ifgo_to_ifog(w_hh.astype(jnp.float32), H).T     # (H, 4H)
    bias = _reorder_ifgo_to_ifog(
        (b_ih + b_hh).astype(jnp.float32), H
    ).reshape(1, 4 * H)

    # Block-diagonal x-side weights + step-tiled bias (one hoisted matmul).
    w_big = jnp.kron(jnp.eye(Tm1, dtype=jnp.float32), w_ihT)          # (Tm1*I, Tm1*4H)
    b_big = jnp.tile(bias, (1, Tm1))                                  # (1, Tm1*4H)

    # Attention weights acting on the driving series (the h/c/bias terms are
    # constant over input_size and cancel in the softmax, so they are dropped).
    awx = attn_w[0, 2 * H:].astype(jnp.float32)                       # (Tm1,)
    w_sx = jnp.kron(awx.reshape(Tm1, 1), jnp.eye(I, dtype=jnp.float32))  # (Tm1*I, I)

    nb = BP // BT
    xt_flat, xe_flat = pl.pallas_call(
        encoder_kernel,
        grid=(nb,),
        in_specs=[
            pl.BlockSpec((BT, Tm1 * I), lambda b: (b, 0)),            # x
            pl.BlockSpec((Tm1 * I, I), lambda b: (0, 0)),             # w_sx
            pl.BlockSpec((Tm1 * I, Tm1 * 4 * H), lambda b: (0, 0)),   # w_big
            pl.BlockSpec((1, Tm1 * 4 * H), lambda b: (0, 0)),         # b_big
            pl.BlockSpec((H, 4 * H), lambda b: (0, 0)),               # w_hhT
        ],
        out_specs=[
            pl.BlockSpec((BT, Tm1 * I), lambda b: (b, 0)),
            pl.BlockSpec((BT, Tm1 * H), lambda b: (b, 0)),
        ],
        out_shape=(
            jax.ShapeDtypeStruct((BP, Tm1 * I), jnp.float32),
            jax.ShapeDtypeStruct((BP, Tm1 * H), jnp.float32),
        ),
        compiler_params=pltpu.CompilerParams(
            dimension_semantics=("parallel",)     # shards batch tiles on v7x
        ),
    )(x_flat, w_sx, w_big, b_big, w_hhT)

    X_tilde = xt_flat[:B].reshape(B, Tm1, I)      # reshape only — no transpose
    X_encoded = xe_flat[:B].reshape(B, Tm1, H)
    return X_tilde, X_encoded


# ----------------------------------------------------------------------------
# Pure-JAX reference (mirrors the PyTorch forward literally)
# ----------------------------------------------------------------------------
def encoder_reference(X, w_ih, w_hh, b_ih, b_hh, attn_w, attn_b, H):
    B, Tm1, I = X.shape
    h = jnp.zeros((B, H), jnp.float32)
    c = jnp.zeros((B, H), jnp.float32)
    X_tilde_l, X_enc_l = [], []
    for t in range(Tm1):
        xp = jnp.transpose(X, (0, 2, 1))                               # (B, I, Tm1)
        hh = jnp.broadcast_to(h[:, None, :], (B, I, H))
        cc = jnp.broadcast_to(c[:, None, :], (B, I, H))
        cat = jnp.concatenate([hh, cc, xp], axis=2).reshape(-1, 2 * H + Tm1)
        score = cat @ attn_w.T + attn_b                                # (B*I, 1)
        alpha = jax.nn.softmax(score.reshape(B, I), axis=1)
        x_tilde = alpha * X[:, t, :]
        gates = x_tilde @ w_ih.T + h @ w_hh.T + b_ih + b_hh
        i_g = jax.nn.sigmoid(gates[:, :H])
        f_g = jax.nn.sigmoid(gates[:, H:2 * H])
        g_g = jnp.tanh(gates[:, 2 * H:3 * H])
        o_g = jax.nn.sigmoid(gates[:, 3 * H:])
        c = f_g * c + i_g * g_g
        h = o_g * jnp.tanh(c)
        X_tilde_l.append(x_tilde)
        X_enc_l.append(h)
    return jnp.stack(X_tilde_l, axis=1), jnp.stack(X_enc_l, axis=1)


# ----------------------------------------------------------------------------
# Main
# ----------------------------------------------------------------------------
if __name__ == "__main__":
    # Small shapes consistent with the module's forward: X: (batch, T-1, input_size)
    B, T, I, H = 2, 9, 16, 32
    Tm1 = T - 1

    key = jax.random.PRNGKey(0)
    kx, k1, k2, k3, k4, k5, k6 = jax.random.split(key, 7)

    X = jax.random.normal(kx, (B, Tm1, I), jnp.float32)

    # Deterministic parameter init (PyTorch-like uniform bounds).
    lstm_bound = 1.0 / np.sqrt(H)
    w_ih = jax.random.uniform(k1, (4 * H, I), jnp.float32, -lstm_bound, lstm_bound)
    w_hh = jax.random.uniform(k2, (4 * H, H), jnp.float32, -lstm_bound, lstm_bound)
    b_ih = jax.random.uniform(k3, (4 * H,), jnp.float32, -lstm_bound, lstm_bound)
    b_hh = jax.random.uniform(k4, (4 * H,), jnp.float32, -lstm_bound, lstm_bound)

    attn_in = 2 * H + Tm1
    attn_bound = 1.0 / np.sqrt(attn_in)
    attn_w = jax.random.uniform(k5, (1, attn_in), jnp.float32, -attn_bound, attn_bound)
    attn_b = jax.random.uniform(k6, (1,), jnp.float32, -attn_bound, attn_bound)

    X_tilde, X_encoded = encoder_forward(
        X, w_ih, w_hh, b_ih, b_hh, attn_w, attn_b, encoder_num_hidden=H
    )
    jax.block_until_ready((X_tilde, X_encoded))

    # Correctness check against the literal reference.
    Xt_ref, Xe_ref = encoder_reference(X, w_ih, w_hh, b_ih, b_hh, attn_w, attn_b, H)
    assert X_tilde.shape == (B, Tm1, I) and X_encoded.shape == (B, Tm1, H)
    np.testing.assert_allclose(np.asarray(X_tilde), np.asarray(Xt_ref), rtol=1e-5, atol=1e-5)
    np.testing.assert_allclose(np.asarray(X_encoded), np.asarray(Xe_ref), rtol=1e-5, atol=1e-5)

    print("KERNEL_OK")
</pallas_src>

<mosaic_0001>
module attributes {stable_mosaic.version = 11 : i64} {
  func.func @encoder_kernel(%arg0: i32, %arg1: memref<8x128xf32, #tpu.memory_space<vmem>>, %arg2: memref<128x16xf32, #tpu.memory_space<vmem>>, %arg3: memref<128x1024xf32, #tpu.memory_space<vmem>>, %arg4: memref<1x1024xf32, #tpu.memory_space<vmem>>, %arg5: memref<32x128xf32, #tpu.memory_space<vmem>>, %arg6: memref<8x128xf32, #tpu.memory_space<vmem>>, %arg7: memref<8x256xf32, #tpu.memory_space<vmem>>) attributes {dimension_semantics = [#tpu.dimension_semantics<parallel>], iteration_bounds = array<i64: 1>, scalar_prefetch = 0 : i64, scratch_operands = 0 : i64, tpu.core_type = #tpu.core_type<tc>, window_params = [{transform_indices = @transform_0, window_bounds = array<i64: 8, 128>}, {pipeline_mode = #tpu.pipeline_mode<synchronous>, transform_indices = @transform_1, window_bounds = array<i64: 128, 16>}, {pipeline_mode = #tpu.pipeline_mode<synchronous>, transform_indices = @transform_2, window_bounds = array<i64: 128, 1024>}, {pipeline_mode = #tpu.pipeline_mode<synchronous>, transform_indices = @transform_3, window_bounds = array<i64: 1, 1024>}, {pipeline_mode = #tpu.pipeline_mode<synchronous>, transform_indices = @transform_4, window_bounds = array<i64: 32, 128>}, {transform_indices = @transform_5, window_bounds = array<i64: 8, 128>}, {transform_indices = @transform_6, window_bounds = array<i64: 8, 256>}]} {
    %c0 = arith.constant 0 : index
    %c0_0 = arith.constant 0 : index
    %0 = vector.load %arg1[%c0, %c0_0] : memref<8x128xf32, #tpu.memory_space<vmem>>, vector<8x128xf32>
    %c0_1 = arith.constant 0 : index
    %c0_2 = arith.constant 0 : index
    %1 = vector.load %arg2[%c0_1, %c0_2] : memref<128x16xf32, #tpu.memory_space<vmem>>, vector<128x16xf32>
    %cst = arith.constant dense<0.000000e+00> : vector<8x16xf32>
    %2 = tpu.matmul %0, %1, %cst {dimension_numbers = #tpu.dot_dimension_numbers<[1], [0], [0], [1], [0, 0, 1, 1], [], []>} : vector<8x128xf32>, vector<128x16xf32>, vector<8x16xf32> -> vector<8x16xf32>
    %cst_3 = arith.constant dense<0xFF800000> : vector<8xf32>
    %3 = vector.multi_reduction <maximumf>, %2, %cst_3 [1] : vector<8x16xf32> to vector<8xf32>
    %4 = vector.shape_cast %3 : vector<8xf32> to vector<8x1xf32>
    %5 = vector.broadcast %4 : vector<8x1xf32> to vector<8x16xf32>
    %6 = arith.subf %2, %5 : vector<8x16xf32>
    %7 = math.exp %6 : vector<8x16xf32>
    %cst_4 = arith.constant dense<0.000000e+00> : vector<8xf32>
    %8 = vector.multi_reduction <add>, %7, %cst_4 [1] : vector<8x16xf32> to vector<8xf32>
    %9 = vector.shape_cast %8 : vector<8xf32> to vector<8x1xf32>
    %10 = vector.broadcast %9 : vector<8x1xf32> to vector<8x16xf32>
    %11 = arith.divf %7, %10 : vector<8x16xf32>
    %12 = tpu.concatenate %11, %11, %11, %11, %11, %11, %11, %11 in 1 : vector<8x16xf32>, vector<8x16xf32>, vector<8x16xf32>, vector<8x16xf32>, vector<8x16xf32>, vector<8x16xf32>, vector<8x16xf32>, vector<8x16xf32> -> vector<8x128xf32>
    %13 = arith.mulf %12, %0 : vector<8x128xf32>
    %c0_5 = arith.constant 0 : index
    %c0_6 = arith.constant 0 : index
    %14 = vector.load %arg6[%c0_5, %c0_6] : memref<8x128xf32, #tpu.memory_space<vmem>>, vector<8x128xf32>
    tpu.vector_store %arg6[%c0_5, %c0_6], %13 {strides = array<i32>} : memref<8x128xf32, #tpu.memory_space<vmem>>, vector<8x128xf32>,
    %c0_7 = arith.constant 0 : index
    %c0_8 = arith.constant 0 : index
    %15 = vector.load %arg3[%c0_7, %c0_8] : memref<128x1024xf32, #tpu.memory_space<vmem>>, vector<128x1024xf32>
    %cst_9 = arith.constant dense<0.000000e+00> : vector<8x1024xf32>
    %16 = tpu.matmul %13, %15, %cst_9 {dimension_numbers = #tpu.dot_dimension_numbers<[1], [0], [0], [1], [0, 0, 1, 1], [], []>} : vector<8x128xf32>, vector<128x1024xf32>, vector<8x1024xf32> -> vector<8x1024xf32>
    %c0_10 = arith.constant 0 : index
    %c0_11 = arith.constant 0 : index
    %17 = vector.load %arg4[%c0_10, %c0_11] : memref<1x1024xf32, #tpu.memory_space<vmem>>, vector<1x1024xf32>
    %18 = vector.broadcast %17 : vector<1x1024xf32> to vector<8x1024xf32>
    %19 = arith.addf %16, %18 : vector<8x1024xf32>
    %c0_12 = arith.constant 0 : index
    %c0_13 = arith.constant 0 : index
    %20 = vector.load %arg5[%c0_12, %c0_13] : memref<32x128xf32, #tpu.memory_space<vmem>>, vector<32x128xf32>
    %cst_14 = arith.constant 0.000000e+00 : f32
    %21 = vector.broadcast %cst_14 : f32 to vector<8x32xf32>
    %cst_15 = arith.constant 0.000000e+00 : f32
    %22 = vector.broadcast %cst_15 : f32 to vector<8x32xf32>
    %23 = vector.extract_strided_slice %19 {offsets = [0, 0], sizes = [8, 128], strides = [1, 1]} : vector<8x1024xf32> to vector<8x128xf32>
    %cst_16 = arith.constant dense<0.000000e+00> : vector<8x128xf32>
    %24 = tpu.matmul %21, %20, %cst_16 {dimension_numbers = #tpu.dot_dimension_numbers<[1], [0], [0], [1], [0, 0, 1, 1], [], []>} : vector<8x32xf32>, vector<32x128xf32>, vector<8x128xf32> -> vector<8x128xf32>
    %25 = arith.addf %23, %24 : vector<8x128xf32>
    %26 = vector.extract_strided_slice %25 {offsets = [0, 0], sizes = [8, 96], strides = [1, 1]} : vector<8x128xf32> to vector<8x96xf32>
    %27 = arith.negf %26 : vector<8x96xf32>
    %28 = math.exp %27 : vector<8x96xf32>
    %cst_17 = arith.constant 1.000000e+00 : f32
    %29 = vector.broadcast %cst_17 : f32 to vector<8x96xf32>
    %30 = arith.addf %29, %28 : vector<8x96xf32>
    %31 = arith.divf %29, %30 : vector<8x96xf32>
    %32 = vector.extract_strided_slice %31 {offsets = [0, 0], sizes = [8, 32], strides = [1, 1]} : vector<8x96xf32> to vector<8x32xf32>
    %33 = vector.extract_strided_slice %31 {offsets = [0, 32], sizes = [8, 32], strides = [1, 1]} : vector<8x96xf32> to vector<8x32xf32>
    %34 = vector.extract_strided_slice %31 {offsets = [0, 64], sizes = [8, 32], strides = [1, 1]} : vector<8x96xf32> to vector<8x32xf32>
    %35 = vector.extract_strided_slice %25 {offsets = [0, 96], sizes = [8, 32], strides = [1, 1]} : vector<8x128xf32> to vector<8x32xf32>
    %36 = math.tanh %35 : vector<8x32xf32>
    %37 = arith.mulf %33, %22 : vector<8x32xf32>
    %38 = arith.mulf %32, %36 : vector<8x32xf32>
    %39 = arith.addf %37, %38 : vector<8x32xf32>
    %40 = math.tanh %39 : vector<8x32xf32>
    %41 = arith.mulf %34, %40 : vector<8x32xf32>
    %42 = vector.extract_strided_slice %19 {offsets = [0, 128], sizes = [8, 128], strides = [1, 1]} : vector<8x1024xf32> to vector<8x128xf32>
    %cst_18 = arith.constant dense<0.000000e+00> : vector<8x128xf32>
    %43 = tpu.matmul %41, %20, %cst_18 {dimension_numbers = #tpu.dot_dimension_numbers<[1], [0], [0], [1], [0, 0, 1, 1], [], []>} : vector<8x32xf32>, vector<32x128xf32>, vector<8x128xf32> -> vector<8x128xf32>
    %44 = arith.addf %42, %43 : vector<8x128xf32>
    %45 = vector.extract_strided_slice %44 {offsets = [0, 0], sizes = [8, 96], strides = [1, 1]} : vector<8x128xf32> to vector<8x96xf32>
    %46 = arith.negf %45 : vector<8x96xf32>
    %47 = math.exp %46 : vector<8x96xf32>
    %cst_19 = arith.constant 1.000000e+00 : f32
    %48 = vector.broadcast %cst_19 : f32 to vector<8x96xf32>
    %49 = arith.addf %48, %47 : vector<8x96xf32>
    %50 = arith.divf %48, %49 : vector<8x96xf32>
    %51 = vector.extract_strided_slice %50 {offsets = [0, 0], sizes = [8, 32], strides = [1, 1]} : vector<8x96xf32> to vector<8x32xf32>
    %52 = vector.extract_strided_slice %50 {offsets = [0, 32], sizes = [8, 32], strides = [1, 1]} : vector<8x96xf32> to vector<8x32xf32>
    %53 = vector.extract_strided_slice %50 {offsets = [0, 64], sizes = [8, 32], strides = [1, 1]} : vector<8x96xf32> to vector<8x32xf32>
    %54 = vector.extract_strided_slice %44 {offsets = [0, 96], sizes = [8, 32], strides = [1, 1]} : vector<8x128xf32> to vector<8x32xf32>
    %55 = math.tanh %54 : vector<8x32xf32>
    %56 = arith.mulf %52, %39 : vector<8x32xf32>
    %57 = arith.mulf %51, %55 : vector<8x32xf32>
    %58 = arith.addf %56, %57 : vector<8x32xf32>
    %59 = math.tanh %58 : vector<8x32xf32>
    %60 = arith.mulf %53, %59 : vector<8x32xf32>
    %61 = vector.extract_strided_slice %19 {offsets = [0, 256], sizes = [8, 128], strides = [1, 1]} : vector<8x1024xf32> to vector<8x128xf32>
    %cst_20 = arith.constant dense<0.000000e+00> : vector<8x128xf32>
    %62 = tpu.matmul %60, %20, %cst_20 {dimension_numbers = #tpu.dot_dimension_numbers<[1], [0], [0], [1], [0, 0, 1, 1], [], []>} : vector<8x32xf32>, vector<32x128xf32>, vector<8x128xf32> -> vector<8x128xf32>
    %63 = arith.addf %61, %62 : vector<8x128xf32>
    %64 = vector.extract_strided_slice %63 {offsets = [0, 0], sizes = [8, 96], strides = [1, 1]} : vector<8x128xf32> to vector<8x96xf32>
    %65 = arith.negf %64 : vector<8x96xf32>
    %66 = math.exp %65 : vector<8x96xf32>
    %cst_21 = arith.constant 1.000000e+00 : f32
    %67 = vector.broadcast %cst_21 : f32 to vector<8x96xf32>
    %68 = arith.addf %67, %66 : vector<8x96xf32>
    %69 = arith.divf %67, %68 : vector<8x96xf32>
    %70 = vector.extract_strided_slice %69 {offsets = [0, 0], sizes = [8, 32], strides = [1, 1]} : vector<8x96xf32> to vector<8x32xf32>
    %71 = vector.extract_strided_slice %69 {offsets = [0, 32], sizes = [8, 32], strides = [1, 1]} : vector<8x96xf32> to vector<8x32xf32>
    %72 = vector.extract_strided_slice %69 {offsets = [0, 64], sizes = [8, 32], strides = [1, 1]} : vector<8x96xf32> to vector<8x32xf32>
    %73 = vector.extract_strided_slice %63 {offsets = [0, 96], sizes = [8, 32], strides = [1, 1]} : vector<8x128xf32> to vector<8x32xf32>
    %74 = math.tanh %73 : vector<8x32xf32>
    %75 = arith.mulf %71, %58 : vector<8x32xf32>
    %76 = arith.mulf %70, %74 : vector<8x32xf32>
    %77 = arith.addf %75, %76 : vector<8x32xf32>
    %78 = math.tanh %77 : vector<8x32xf32>
    %79 = arith.mulf %72, %78 : vector<8x32xf32>
    %80 = vector.extract_strided_slice %19 {offsets = [0, 384], sizes = [8, 128], strides = [1, 1]} : vector<8x1024xf32> to vector<8x128xf32>
    %cst_22 = arith.constant dense<0.000000e+00> : vector<8x128xf32>
    %81 = tpu.matmul %79, %20, %cst_22 {dimension_numbers = #tpu.dot_dimension_numbers<[1], [0], [0], [1], [0, 0, 1, 1], [], []>} : vector<8x32xf32>, vector<32x128xf32>, vector<8x128xf32> -> vector<8x128xf32>
    %82 = arith.addf %80, %81 : vector<8x128xf32>
    %83 = vector.extract_strided_slice %82 {offsets = [0, 0], sizes = [8, 96], strides = [1, 1]} : vector<8x128xf32> to vector<8x96xf32>
    %84 = arith.negf %83 : vector<8x96xf32>
    %85 = math.exp %84 : vector<8x96xf32>
    %cst_23 = arith.constant 1.000000e+00 : f32
    %86 = vector.broadcast %cst_23 : f32 to vector<8x96xf32>
    %87 = arith.addf %86, %85 : vector<8x96xf32>
    %88 = arith.divf %86, %87 : vector<8x96xf32>
    %89 = vector.extract_strided_slice %88 {offsets = [0, 0], sizes = [8, 32], strides = [1, 1]} : vector<8x96xf32> to vector<8x32xf32>
    %90 = vector.extract_strided_slice %88 {offsets = [0, 32], sizes = [8, 32], strides = [1, 1]} : vector<8x96xf32> to vector<8x32xf32>
    %91 = vector.extract_strided_slice %88 {offsets = [0, 64], sizes = [8, 32], strides = [1, 1]} : vector<8x96xf32> to vector<8x32xf32>
    %92 = vector.extract_strided_slice %82 {offsets = [0, 96], sizes = [8, 32], strides = [1, 1]} : vector<8x128xf32> to vector<8x32xf32>
    %93 = math.tanh %92 : vector<8x32xf32>
    %94 = arith.mulf %90, %77 : vector<8x32xf32>
    %95 = arith.mulf %89, %93 : vector<8x32xf32>
    %96 = arith.addf %94, %95 : vector<8x32xf32>
    %97 = math.tanh %96 : vector<8x32xf32>
    %98 = arith.mulf %91, %97 : vector<8x32xf32>
    %99 = vector.extract_strided_slice %19 {offsets = [0, 512], sizes = [8, 128], strides = [1, 1]} : vector<8x1024xf32> to vector<8x128xf32>
    %cst_24 = arith.constant dense<0.000000e+00> : vector<8x128xf32>
    %100 = tpu.matmul %98, %20, %cst_24 {dimension_numbers = #tpu.dot_dimension_numbers<[1], [0], [0], [1], [0, 0, 1, 1], [], []>} : vector<8x32xf32>, vector<32x128xf32>, vector<8x128xf32> -> vector<8x128xf32>
    %101 = arith.addf %99, %100 : vector<8x128xf32>
    %102 = vector.extract_strided_slice %101 {offsets = [0, 0], sizes = [8, 96], strides = [1, 1]} : vector<8x128xf32> to vector<8x96xf32>
    %103 = arith.negf %102 : vector<8x96xf32>
    %104 = math.exp %103 : vector<8x96xf32>
    %cst_25 = arith.constant 1.000000e+00 : f32
    %105 = vector.broadcast %cst_25 : f32 to vector<8x96xf32>
    %106 = arith.addf %105, %104 : vector<8x96xf32>
    %107 = arith.divf %105, %106 : vector<8x96xf32>
    %108 = vector.extract_strided_slice %107 {offsets = [0, 0], sizes = [8, 32], strides = [1, 1]} : vector<8x96xf32> to vector<8x32xf32>
    %109 = vector.extract_strided_slice %107 {offsets = [0, 32], sizes = [8, 32], strides = [1, 1]} : vector<8x96xf32> to vector<8x32xf32>
    %110 = vector.extract_strided_slice %107 {offsets = [0, 64], sizes = [8, 32], strides = [1, 1]} : vector<8x96xf32> to vector<8x32xf32>
    %111 = vector.extract_strided_slice %101 {offsets = [0, 96], sizes = [8, 32], strides = [1, 1]} : vector<8x128xf32> to vector<8x32xf32>
    %112 = math.tanh %111 : vector<8x32xf32>
    %113 = arith.mulf %109, %96 : vector<8x32xf32>
    %114 = arith.mulf %108, %112 : vector<8x32xf32>
    %115 = arith.addf %113, %114 : vector<8x32xf32>
    %116 = math.tanh %115 : vector<8x32xf32>
    %117 = arith.mulf %110, %116 : vector<8x32xf32>
    %118 = vector.extract_strided_slice %19 {offsets = [0, 640], sizes = [8, 128], strides = [1, 1]} : vector<8x1024xf32> to vector<8x128xf32>
    %cst_26 = arith.constant dense<0.000000e+00> : vector<8x128xf32>
    %119 = tpu.matmul %117, %20, %cst_26 {dimension_numbers = #tpu.dot_dimension_numbers<[1], [0], [0], [1], [0, 0, 1, 1], [], []>} : vector<8x32xf32>, vector<32x128xf32>, vector<8x128xf32> -> vector<8x128xf32>
    %120 = arith.addf %118, %119 : vector<8x128xf32>
    %121 = vector.extract_strided_slice %120 {offsets = [0, 0], sizes = [8, 96], strides = [1, 1]} : vector<8x128xf32> to vector<8x96xf32>
    %122 = arith.negf %121 : vector<8x96xf32>
    %123 = math.exp %122 : vector<8x96xf32>
    %cst_27 = arith.constant 1.000000e+00 : f32
    %124 = vector.broadcast %cst_27 : f32 to vector<8x96xf32>
    %125 = arith.addf %124, %123 : vector<8x96xf32>
    %126 = arith.divf %124, %125 : vector<8x96xf32>
    %127 = vector.extract_strided_slice %126 {offsets = [0, 0], sizes = [8, 32], strides = [1, 1]} : vector<8x96xf32> to vector<8x32xf32>
    %128 = vector.extract_strided_slice %126 {offsets = [0, 32], sizes = [8, 32], strides = [1, 1]} : vector<8x96xf32> to vector<8x32xf32>
    %129 = vector.extract_strided_slice %126 {offsets = [0, 64], sizes = [8, 32], strides = [1, 1]} : vector<8x96xf32> to vector<8x32xf32>
    %130 = vector.extract_strided_slice %120 {offsets = [0, 96], sizes = [8, 32], strides = [1, 1]} : vector<8x128xf32> to vector<8x32xf32>
    %131 = math.tanh %130 : vector<8x32xf32>
    %132 = arith.mulf %128, %115 : vector<8x32xf32>
    %133 = arith.mulf %127, %131 : vector<8x32xf32>
    %134 = arith.addf %132, %133 : vector<8x32xf32>
    %135 = math.tanh %134 : vector<8x32xf32>
    %136 = arith.mulf %129, %135 : vector<8x32xf32>
    %137 = vector.extract_strided_slice %19 {offsets = [0, 768], sizes = [8, 128], strides = [1, 1]} : vector<8x1024xf32> to vector<8x128xf32>
    %cst_28 = arith.constant dense<0.000000e+00> : vector<8x128xf32>
    %138 = tpu.matmul %136, %20, %cst_28 {dimension_numbers = #tpu.dot_dimension_numbers<[1], [0], [0], [1], [0, 0, 1, 1], [], []>} : vector<8x32xf32>, vector<32x128xf32>, vector<8x128xf32> -> vector<8x128xf32>
    %139 = arith.addf %137, %138 : vector<8x128xf32>
    %140 = vector.extract_strided_slice %139 {offsets = [0, 0], sizes = [8, 96], strides = [1, 1]} : vector<8x128xf32> to vector<8x96xf32>
    %141 = arith.negf %140 : vector<8x96xf32>
    %142 = math.exp %141 : vector<8x96xf32>
    %cst_29 = arith.constant 1.000000e+00 : f32
    %143 = vector.broadcast %cst_29 : f32 to vector<8x96xf32>
    %144 = arith.addf %143, %142 : vector<8x96xf32>
    %145 = arith.divf %143, %144 : vector<8x96xf32>
    %146 = vector.extract_strided_slice %145 {offsets = [0, 0], sizes = [8, 32], strides = [1, 1]} : vector<8x96xf32> to vector<8x32xf32>
    %147 = vector.extract_strided_slice %145 {offsets = [0, 32], sizes = [8, 32], strides = [1, 1]} : vector<8x96xf32> to vector<8x32xf32>
    %148 = vector.extract_strided_slice %145 {offsets = [0, 64], sizes = [8, 32], strides = [1, 1]} : vector<8x96xf32> to vector<8x32xf32>
    %149 = vector.extract_strided_slice %139 {offsets = [0, 96], sizes = [8, 32], strides = [1, 1]} : vector<8x128xf32> to vector<8x32xf32>
    %150 = math.tanh %149 : vector<8x32xf32>
    %151 = arith.mulf %147, %134 : vector<8x32xf32>
    %152 = arith.mulf %146, %150 : vector<8x32xf32>
    %153 = arith.addf %151, %152 : vector<8x32xf32>
    %154 = math.tanh %153 : vector<8x32xf32>
    %155 = arith.mulf %148, %154 : vector<8x32xf32>
    %156 = vector.extract_strided_slice %19 {offsets = [0, 896], sizes = [8, 128], strides = [1, 1]} : vector<8x1024xf32> to vector<8x128xf32>
    %cst_30 = arith.constant dense<0.000000e+00> : vector<8x128xf32>
    %157 = tpu.matmul %155, %20, %cst_30 {dimension_numbers = #tpu.dot_dimension_numbers<[1], [0], [0], [1], [0, 0, 1, 1], [], []>} : vector<8x32xf32>, vector<32x128xf32>, vector<8x128xf32> -> vector<8x128xf32>
    %158 = arith.addf %156, %157 : vector<8x128xf32>
    %159 = vector.extract_strided_slice %158 {offsets = [0, 0], sizes = [8, 96], strides = [1, 1]} : vector<8x128xf32> to vector<8x96xf32>
    %160 = arith.negf %159 : vector<8x96xf32>
    %161 = math.exp %160 : vector<8x96xf32>
    %cst_31 = arith.constant 1.000000e+00 : f32
    %162 = vector.broadcast %cst_31 : f32 to vector<8x96xf32>
    %163 = arith.addf %162, %161 : vector<8x96xf32>
    %164 = arith.divf %162, %163 : vector<8x96xf32>
    %165 = vector.extract_strided_slice %164 {offsets = [0, 0], sizes = [8, 32], strides = [1, 1]} : vector<8x96xf32> to vector<8x32xf32>
    %166 = vector.extract_strided_slice %164 {offsets = [0, 32], sizes = [8, 32], strides = [1, 1]} : vector<8x96xf32> to vector<8x32xf32>
    %167 = vector.extract_strided_slice %164 {offsets = [0, 64], sizes = [8, 32], strides = [1, 1]} : vector<8x96xf32> to vector<8x32xf32>
    %168 = vector.extract_strided_slice %158 {offsets = [0, 96], sizes = [8, 32], strides = [1, 1]} : vector<8x128xf32> to vector<8x32xf32>
    %169 = math.tanh %168 : vector<8x32xf32>
    %170 = arith.mulf %166, %153 : vector<8x32xf32>
    %171 = arith.mulf %165, %169 : vector<8x32xf32>
    %172 = arith.addf %170, %171 : vector<8x32xf32>
    %173 = math.tanh %172 : vector<8x32xf32>
    %174 = arith.mulf %167, %173 : vector<8x32xf32>
    %175 = tpu.concatenate %41, %60, %79, %98, %117, %136, %155, %174 in 1 : vector<8x32xf32>, vector<8x32xf32>, vector<8x32xf32>, vector<8x32xf32>, vector<8x32xf32>, vector<8x32xf32>, vector<8x32xf32>, vector<8x32xf32> -> vector<8x256xf32>
    %c0_32 = arith.constant 0 : index
    %c0_33 = arith.constant 0 : index
    %176 = vector.load %arg7[%c0_32, %c0_33] : memref<8x256xf32, #tpu.memory_space<vmem>>, vector<8x256xf32>
    tpu.vector_store %arg7[%c0_32, %c0_33], %175 {strides = array<i32>} : memref<8x256xf32, #tpu.memory_space<vmem>>, vector<8x256xf32>,
    return
  }
  func.func @transform_0(%arg0: i32) -> (i32, i32) {
    %c0_i32 = arith.constant 0 : i32
    %c0_i32_0 = arith.constant 0 : i32
    return %arg0, %c0_i32 : i32, i32
  }
  func.func @transform_1(%arg0: i32) -> (i32, i32) {
    %c0_i32 = arith.constant 0 : i32
    %c0_i32_0 = arith.constant 0 : i32
    %c0_i32_1 = arith.constant 0 : i32
    return %c0_i32, %c0_i32_0 : i32, i32
  }
  func.func @transform_2(%arg0: i32) -> (i32, i32) {
    %c0_i32 = arith.constant 0 : i32
    %c0_i32_0 = arith.constant 0 : i32
    %c0_i32_1 = arith.constant 0 : i32
    return %c0_i32, %c0_i32_0 : i32, i32
  }
  func.func @transform_3(%arg0: i32) -> (i32, i32) {
    %c0_i32 = arith.constant 0 : i32
    %c0_i32_0 = arith.constant 0 : i32
    %c0_i32_1 = arith.constant 0 : i32
    return %c0_i32, %c0_i32_0 : i32, i32
  }
  func.func @transform_4(%arg0: i32) -> (i32, i32) {
    %c0_i32 = arith.constant 0 : i32
    %c0_i32_0 = arith.constant 0 : i32
    %c0_i32_1 = arith.constant 0 : i32
    return %c0_i32, %c0_i32_0 : i32, i32
  }
  func.func @transform_5(%arg0: i32) -> (i32, i32) {
    %c0_i32 = arith.constant 0 : i32
    %c0_i32_0 = arith.constant 0 : i32
    return %arg0, %c0_i32 : i32, i32
  }
  func.func @transform_6(%arg0: i32) -> (i32, i32) {
    %c0_i32 = arith.constant 0 : i32
    %c0_i32_0 = arith.constant 0 : i32
    return %arg0, %c0_i32 : i32, i32
  }
}

</mosaic_0001>

<bundles_post_ra>
// kernel: encoder_forward.1
= control target key start
LH: loop header
LB: loop body
LE: loop exit
PB: predicated region body
PF: predicated region fallthrough
CT: control target
= control target key end

     0   :  { %v1918_v0 = vmov 0.0|0.0   ;;  %vm1919_vm0 = vmmov 0   ;;  %v1920_v4 = vmov 0.0   ;;  %vm109_vm1 = vcmask 130048   ;;  %s1921_s9 = smov 48   ;;  %s1922_s10 = smov 16   ;;  %s2633_s1 = inlined_call_operand.vmem [shape: f32[128,16], index: 1, kind: input, shape index: {}]   ;;  %s2634_s0 = inlined_call_operand.vmem [shape: f32[8,128], index: 0, kind: input, shape index: {}]   ;;  %s2635_s2 = inlined_call_operand.vmem [shape: f32[128,1024], index: 2, kind: input, shape index: {}]   ;;  %s2636_s5 = inlined_call_operand.vmem [shape: f32[8,128], index: 5, kind: output, shape index: {0}]   ;;  %s2637_s4 = inlined_call_operand.vmem [shape: f32[32,128], index: 4, kind: input, shape index: {}]   ;;  %s2638_s3 = inlined_call_operand.vmem [shape: f32[1,1024], index: 3, kind: input, shape index: {}]   ;;  %s2639_s6 = inlined_call_operand.vmem [shape: f32[8,256], index: 6, kind: output, shape index: {1}]  }
   0x1   :  { %1640 = vmatprep.subr.bf16.mxu0 %v1918_v0  ;;  %v23_v1 = vld [vmem:[%s2633_s1] sm:$0xff]  ;;  %v24_v2 = vld [vmem:[%s2633_s1 + $0x8] sm:$0xff]  ;;  %v25_v3 = vld [vmem:[%s2633_s1 + $0x10] sm:$0xff]  ;;  %1549 = vmatprep.mubr.msk.f32.mxu0 %vm1919_vm0, %v1920_v4  ;;  %s1923_s27 = smov 32   ;;  %s1924_s14 = smov 64   ;;  %vm144_vm2 = vcmask 261120  }
   0x2   :  { %v1641_v5 = vpack.c.bf16 %v24_v2, %v23_v1  ;;  %v26_v6 = vld [vmem:[%s2633_s1 + $0x18] sm:$0xff]  ;;  %392 = vmatprep.mubr.f32.mxu1 %v1920_v4  ;;  %v27_v8 = vld [vmem:[%s2633_s1 + $0x20] sm:$0xff]  ;;  %v28_v9 = vld [vmem:[%s2633_s1 + $0x28] sm:$0xff]  ;;  %s1925_s15 = smov 80   ;;  %s1926_s16 = smov 96   ;;  %vm146_vm3 = vcmask 392192  }
   0x3   :  { %v1644_v7 = vpack.c.bf16 %v26_v6, %v25_v3  ;;  %v1647_v10 = vpack.c.bf16 %v28_v9, %v27_v8  ;;  %v29_v11 = vld [vmem:[%s2633_s1 + $0x30] sm:$0xff]  ;;  %v30_v12 = vld [vmem:[%s2633_s1 + $0x38] sm:$0xff]  ;;  %v31_v14 = vld [vmem:[%s2633_s1 + $0x40] sm:$0xff]  ;;  %s1927_s17 = smov 112   ;;  %vm148_vm4 = vcmask 523264   ;;  %vm150_vm5 = vcmask 654336  }
   0x4   :  { %1642 = vmatpush3.bf16.msra.mxu0 %v1641_v5  ;;  %v1650_v13 = vpack.c.bf16 %v30_v12, %v29_v11  ;;  %v32_v15 = vld [vmem:[%s2633_s1 + $0x48] sm:$0xff]  ;;  %v33_v17 = vld [vmem:[%s2633_s1 + $0x50] sm:$0xff]  ;;  %v34_v18 = vld [vmem:[%s2633_s1 + $0x58] sm:$0xff]  ;;  %vm152_vm6 = vcmask 785408   ;;  %vm154_vm7 = vcmask 916480  }
   0x5   :  { %1643 = vmatprep.subr.bf16.mxu0 %v1918_v0  ;;  %v1653_v16 = vpack.c.bf16 %v32_v15, %v31_v14  ;;  %v1656_v19 = vpack.c.bf16 %v34_v18, %v33_v17  ;;  %v35_v20 = vld [vmem:[%s2633_s1 + $0x60] sm:$0xff]  ;;  %v36_v21 = vld [vmem:[%s2633_s1 + $0x68] sm:$0xff]  ;;  %v37_v23 = vld [vmem:[%s2633_s1 + $0x70] sm:$0xff] }
   0x6   :  { %v1659_v22 = vpack.c.bf16 %v36_v21, %v35_v20  ;;  %v38_v24 = vld [vmem:[%s2633_s1 + $0x78] sm:$0xff]  ;;  %v2025_v26 = vld [vmem:[%s2634_s0] sm:$0xff]  ;;  %v159_v35 = vld [vmem:[%s2635_s2 + $0x8] sm:$0xff] }
   0x7   :  { %v1662_v25 = vpack.c.bf16 %v38_v24, %v37_v23  ;;  %v167_v36 = vld [vmem:[%s2635_s2 + $0x48] sm:$0xff]  ;;  %v161_v37 = vld [vmem:[%s2635_s2 + $0x18] sm:$0xff]  ;;  %v158_v40 = vld [vmem:[%s2635_s2] sm:$0xff] }
   0x8   :  { %1645 = vmatpush3.bf16.msra.mxu0 %v1644_v7  ;;  %v1664_v38 = vpack.c.bf16 %v167_v36, %v159_v35  ;;  %v169_v39 = vld [vmem:[%s2635_s2 + $0x58] sm:$0xff]  ;;  %v166_v41 = vld [vmem:[%s2635_s2 + $0x40] sm:$0xff]  ;;  %v160_v44 = vld [vmem:[%s2635_s2 + $0x10] sm:$0xff] }
   0x9   :  { %1646 = vmatprep.subr.bf16.mxu0 %v1918_v0  ;;  %v1696_v42 = vpack.c.bf16 %v169_v39, %v161_v37  ;;  %v1666_v43 = vpack.c.bf16 %v166_v41, %v158_v40  ;;  %v168_v45 = vld [vmem:[%s2635_s2 + $0x50] sm:$0xff]  ;;  %v175_v46 = vld [vmem:[%s2635_s2 + $0x88] sm:$0xff]  ;;  %v177_v49 = vld [vmem:[%s2635_s2 + $0x98] sm:$0xff] }
   0xa   :  { %1665 = vmatprep.subr.bf16.mxu1 %v1664_v38  ;;  %v1698_v47 = vpack.c.bf16 %v168_v45, %v160_v44  ;;  %v183_v48 = vld [vmem:[%s2635_s2 + $0xc8] sm:$0xff]  ;;  %v185_v50 = vld [vmem:[%s2635_s2 + $0xd8] sm:$0xff]  ;;  %v174_v53 = vld [vmem:[%s2635_s2 + $0x80] sm:$0xff] }
   0xb   :  { %1667 = vmatpush1.bf16.msra.mxu1 %v1666_v43  ;;  %v1668_v51 = vpack.c.bf16 %v183_v48, %v175_v46  ;;  %v1700_v52 = vpack.c.bf16 %v185_v50, %v177_v49  ;;  %v182_v54 = vld [vmem:[%s2635_s2 + $0xc0] sm:$0xff]  ;;  %v176_v55 = vld [vmem:[%s2635_s2 + $0x90] sm:$0xff]  ;;  %v191_v58 = vld [vmem:[%s2635_s2 + $0x108] sm:$0xff] }
   0xc   :  { %1648 = vmatpush3.bf16.msra.mxu0 %v1647_v10  ;;  %v1670_v56 = vpack.c.bf16 %v182_v54, %v174_v53  ;;  %v184_v57 = vld [vmem:[%s2635_s2 + $0xd0] sm:$0xff]  ;;  %v199_v59 = vld [vmem:[%s2635_s2 + $0x148] sm:$0xff]  ;;  %v193_v62 = vld [vmem:[%s2635_s2 + $0x118] sm:$0xff] }
   0xd   :  { %1649 = vmatprep.subr.bf16.mxu0 %v1918_v0  ;;  %1669 = vmatprep.subr.bf16.mxu1 %v1668_v51  ;;  %v1702_v60 = vpack.c.bf16 %v184_v57, %v176_v55  ;;  %v1672_v61 = vpack.c.bf16 %v199_v59, %v191_v58  ;;  %v201_v63 = vld [vmem:[%s2635_s2 + $0x158] sm:$0xff]  ;;  %v190_v1 = vld [vmem:[%s2635_s2 + $0x100] sm:$0xff]  ;;  %v192_v5 = vld [vmem:[%s2635_s2 + $0x110] sm:$0xff] }
   0xe   :  { %v1704_v2 = vpack.c.bf16 %v201_v63, %v193_v62  ;;  %v198_v3 = vld [vmem:[%s2635_s2 + $0x140] sm:$0xff]  ;;  %v200_v6 = vld [vmem:[%s2635_s2 + $0x150] sm:$0xff]  ;;  %v207_v10 = vld [vmem:[%s2635_s2 + $0x188] sm:$0xff] }
   0xf   :  { %1671 = vmatpush1.bf16.msra.mxu1 %v1670_v56  ;;  %v1674_v7 = vpack.c.bf16 %v198_v3, %v190_v1  ;;  %v1706_v8 = vpack.c.bf16 %v200_v6, %v192_v5  ;;  %v215_v11 = vld [vmem:[%s2635_s2 + $0x1c8] sm:$0xff]  ;;  %v209_v12 = vld [vmem:[%s2635_s2 + $0x198] sm:$0xff]  ;;  %v206_v15 = vld [vmem:[%s2635_s2 + $0x180] sm:$0xff] }
  0x10   :  { %1651 = vmatpush3.bf16.msra.mxu0 %v1650_v13  ;;  %1673 = vmatprep.subr.bf16.mxu1 %v1672_v61  ;;  %v1676_v13 = vpack.c.bf16 %v215_v11, %v207_v10  ;;  %v217_v14 = vld [vmem:[%s2635_s2 + $0x1d8] sm:$0xff]  ;;  %v216_v20 = vld [vmem:[%s2635_s2 + $0x1d0] sm:$0xff]  ;;  %v231_v23 = vld [vmem:[%s2635_s2 + $0x248] sm:$0xff] }
  0x11   :  { %1652 = vmatprep.subr.bf16.mxu0 %v1918_v0  ;;  %v1708_v17 = vpack.c.bf16 %v217_v14, %v209_v12  ;;  %v225_v24 = vld [vmem:[%s2635_s2 + $0x218] sm:$0xff]  ;;  %v239_v36 = vld [vmem:[%s2635_s2 + $0x288] sm:$0xff]  ;;  %v238_v41 = vld [vmem:[%s2635_s2 + $0x280] sm:$0xff] }
  0x12   :  { %v247_v37 = vld [vmem:[%s2635_s2 + $0x2c8] sm:$0xff]  ;;  %v241_v38 = vld [vmem:[%s2635_s2 + $0x298] sm:$0xff]  ;;  %v240_v45 = vld [vmem:[%s2635_s2 + $0x290] sm:$0xff] }
  0x13   :  { %1675 = vmatpush1.bf16.msra.mxu1 %v1674_v7  ;;  %v1684_v39 = vpack.c.bf16 %v247_v37, %v239_v36  ;;  %v249_v40 = vld [vmem:[%s2635_s2 + $0x2d8] sm:$0xff]  ;;  %v248_v46 = vld [vmem:[%s2635_s2 + $0x2d0] sm:$0xff]  ;;  %v255_v50 = vld [vmem:[%s2635_s2 + $0x308] sm:$0xff] }
  0x14   :  { %1654 = vmatpush3.bf16.msra.mxu0 %v1653_v16  ;;  %v214_v16 = vld [vmem:[%s2635_s2 + $0x1c0] sm:$0xff]  ;;  %1677 = vmatprep.subr.bf16.mxu1 %v1676_v13  ;;  %v1716_v43 = vpack.c.bf16 %v249_v40, %v241_v38  ;;  %v1718_v48 = vpack.c.bf16 %v248_v46, %v240_v45  ;;  %v263_v51 = vld [vmem:[%s2635_s2 + $0x348] sm:$0xff]  ;;  %v256_v58 = vld [vmem:[%s2635_s2 + $0x310] sm:$0xff] }
  0x15   :  { %1655 = vmatprep.subr.bf16.mxu0 %v1918_v0  ;;  %v1678_v18 = vpack.c.bf16 %v214_v16, %v206_v15  ;;  %v1688_v53 = vpack.c.bf16 %v263_v51, %v255_v50  ;;  %v254_v54 = vld [vmem:[%s2635_s2 + $0x300] sm:$0xff]  ;;  %v264_v59 = vld [vmem:[%s2635_s2 + $0x350] sm:$0xff]  ;;  %v271_v61 = vld [vmem:[%s2635_s2 + $0x388] sm:$0xff] }
  0x16   :  { %v262_v55 = vld [vmem:[%s2635_s2 + $0x340] sm:$0xff]  ;;  %v279_v62 = vld [vmem:[%s2635_s2 + $0x3c8] sm:$0xff]  ;;  %v273_v63 = vld [vmem:[%s2635_s2 + $0x398] sm:$0xff] }
  0x17   :  { %1679 = vmatpush1.bf16.msra.mxu1 %v1678_v18  ;;  %v1690_v57 = vpack.c.bf16 %v262_v55, %v254_v54  ;;  %v1692_v1 = vpack.c.bf16 %v279_v62, %v271_v61  ;;  %v270_v3 = vld [vmem:[%s2635_s2 + $0x380] sm:$0xff]  ;;  %v163_v11 = vld [vmem:[%s2635_s2 + $0x28] sm:$0xff]  ;;  %v165_v13 = vld [vmem:[%s2635_s2 + $0x38] sm:$0xff] }
  0x18   :  { %1657 = vmatpush3.bf16.msra.mxu0 %v1656_v19  ;;  %v208_v19 = vld [vmem:[%s2635_s2 + $0x190] sm:$0xff]  ;;  %v278_v5 = vld [vmem:[%s2635_s2 + $0x3c0] sm:$0xff]  ;;  %v171_v12 = vld [vmem:[%s2635_s2 + $0x68] sm:$0xff] }
  0x19   :  { %1658 = vmatprep.subr.bf16.mxu0 %v1918_v0  ;;  %v1710_v21 = vpack.c.bf16 %v216_v20, %v208_v19  ;;  %v1694_v7 = vpack.c.bf16 %v278_v5, %v270_v3  ;;  %v1728_v14 = vpack.c.bf16 %v171_v12, %v163_v11  ;;  %v173_v15 = vld [vmem:[%s2635_s2 + $0x78] sm:$0xff]  ;;  %v195_v50 = vld [vmem:[%s2635_s2 + $0x128] sm:$0xff]  ;;  %v194_v54 = vld [vmem:[%s2635_s2 + $0x120] sm:$0xff] }
  0x1a   :  { %v1760_v16 = vpack.c.bf16 %v173_v15, %v165_v13  ;;  %v181_v36 = vld [vmem:[%s2635_s2 + $0xb8] sm:$0xff]  ;;  %v203_v51 = vld [vmem:[%s2635_s2 + $0x168] sm:$0xff]  ;;  %v202_v55 = vld [vmem:[%s2635_s2 + $0x160] sm:$0xff] }
  0x1b   :  { %v189_v37 = vld [vmem:[%s2635_s2 + $0xf8] sm:$0xff]  ;;  %v219_v61 = vld [vmem:[%s2635_s2 + $0x1e8] sm:$0xff]  ;;  %v210_v3 = vld [vmem:[%s2635_s2 + $0x1a0] sm:$0xff] }
  0x1c   :  { %1660 = vmatpush3.bf16.msra.mxu0 %v1659_v22  ;;  %v223_v22 = vld [vmem:[%s2635_s2 + $0x208] sm:$0xff]  ;;  %v213_v62 = vld [vmem:[%s2635_s2 + $0x1b8] sm:$0xff]  ;;  %v218_v5 = vld [vmem:[%s2635_s2 + $0x1e0] sm:$0xff] }
  0x1d   :  { %1661 = vmatprep.subr.bf16.mxu0 %v1918_v0  ;;  %v235_v11 = vld [vmem:[%s2635_s2 + $0x268] sm:$0xff]  ;;  %v229_v12 = vld [vmem:[%s2635_s2 + $0x238] sm:$0xff] }
  0x1e   :  { %v237_v13 = vld [vmem:[%s2635_s2 + $0x278] sm:$0xff] }
  0x20   :  { %1663 = vmatpush3.bf16.msra.mxu0 %v1662_v25  ;;  %v1680_v25 = vpack.c.bf16 %v231_v23, %v223_v22 }
  0x21   :  { %1697 = vmatprep.subr.bf16.mxu0 %v1696_v42  ;;  %v246_v42 = vld [vmem:[%s2635_s2 + $0x2c0] sm:$0xff] }
  0x22   :  { %1681 = vmatprep.subr.bf16.mxu1 %v1680_v25  ;;  %v1686_v44 = vpack.c.bf16 %v246_v42, %v238_v41 }
  0x23   :  { %1550 = vmatmul.mubr.f32.vlgmr.msra.gmra.mrb[0].mxu0 %v2025_v26 }
  0x24   :  { %463 = vmatprep.mubr.f32.mxu0 %v1920_v4  ;;  %1699 = vmatpush1.bf16.msra.mxu0 %v1698_v47 }
  0x25   :  { %1701 = vmatprep.subr.bf16.mxu0 %v1700_v52  ;;  %v257_v52 = vld [vmem:[%s2635_s2 + $0x318] sm:$0xff] }
  0x28   :  { %1703 = vmatpush1.bf16.msra.mxu0 %v1702_v60  ;;  %v1722_v60 = vpack.c.bf16 %v264_v59, %v256_v58  ;;  %v196_v58 = vld [vmem:[%s2635_s2 + $0x130] sm:$0xff] }
  0x29   :  { %1705 = vmatprep.subr.bf16.mxu0 %v1704_v2  ;;  %v281_v2 = vld [vmem:[%s2635_s2 + $0x3d8] sm:$0xff]  ;;  %v204_v59 = vld [vmem:[%s2635_s2 + $0x170] sm:$0xff] }
  0x2a   :  { %v1724_v6 = vpack.c.bf16 %v281_v2, %v273_v63  ;;  %v221_v63 = vld [vmem:[%s2635_s2 + $0x1f8] sm:$0xff]  ;;  %v1770_v2 = vpack.c.bf16 %v204_v59, %v196_v58  ;;  %v284_v58 = vld [vmem:[%s2635_s2 + $0x3f0] sm:$0xff] }
  0x2c   :  { %1707 = vmatpush1.bf16.msra.mxu0 %v1706_v8  ;;  %v272_v8 = vld [vmem:[%s2635_s2 + $0x390] sm:$0xff] }
  0x2d   :  { %1709 = vmatprep.subr.bf16.mxu0 %v1708_v17 }
  0x30   :  { %1711 = vmatpush1.bf16.msra.mxu0 %v1710_v21 }
  0xf6   :  { %v105_v27 = vpop.f32.mrb[0].mxu0 }
  0xf7   :  { %v1551_v28 = vpop.f32.mrb[1].mxu0  ;;  %v110_v29 = vsel %vm109_vm1, %v105_v27, -inf }
  0xf8   :  { %111 = vmax.xlane.f32.xlu0 %v110_v29  ;;  %v222_v28 = vld [vmem:[%s2635_s2 + $0x200] sm:$0xff] }
  0xf9   :  { %v230_v29 = vld [vmem:[%s2635_s2 + $0x240] sm:$0xff] }
 0x185   :  { %v112_v30 = vpop.xlane.xlu0 %111 }
 0x186   :  { %v113_v31 = vsub.f32 %v105_v27, %v112_v30  ;;  %v233_v27 = vld [vmem:[%s2635_s2 + $0x258] sm:$0xff] }
 0x187   :  { %v1712_v30 = vpack.c.bf16 %v233_v27, %v225_v24  ;;  %v162_v27 = vld [vmem:[%s2635_s2 + $0x20] sm:$0xff] }
 0x188   :  { %v114_v32 = vmul.f32 1.442695, %v113_v31  ;;  %v1682_v31 = vpack.c.bf16 %v230_v29, %v222_v28  ;;  %v170_v28 = vld [vmem:[%s2635_s2 + $0x60] sm:$0xff] }
 0x189   :  { %1713 = vmatprep.subr.bf16.mxu0 %v1712_v30  ;;  %v164_v30 = vld [vmem:[%s2635_s2 + $0x30] sm:$0xff]  ;;  %v1730_v41 = vpack.c.bf16 %v170_v28, %v162_v27 }
 0x18a   :  { %1850 = vpow2.f32 %v114_v32  ;;  %v224_v32 = vld [vmem:[%s2635_s2 + $0x210] sm:$0xff]  ;;  %1683 = vmatpush1.bf16.msra.mxu1 %v1682_v31 }
 0x18b   :  { %1685 = vmatprep.subr.bf16.mxu1 %v1684_v39  ;;  %v172_v31 = vld [vmem:[%s2635_s2 + $0x70] sm:$0xff] }
 0x18c   :  { %v1762_v42 = vpack.c.bf16 %v172_v31, %v164_v30  ;;  %v250_v30 = vld [vmem:[%s2635_s2 + $0x2e0] sm:$0xff] }
 0x18e   :  { %1687 = vmatpush1.bf16.msra.mxu1 %v1686_v44  ;;  %v186_v44 = vld [vmem:[%s2635_s2 + $0xe0] sm:$0xff] }
 0x18f   :  { %1689 = vmatprep.subr.bf16.mxu1 %v1688_v53 }
 0x192   :  { %1691 = vmatpush1.bf16.msra.mxu1 %v1690_v57 }
 0x193   :  { %1693 = vmatprep.subr.bf16.mxu1 %v1692_v1  ;;  %v1738_v1 = vpack.c.bf16 %v202_v55, %v194_v54 }
 0x194   :  { %v2030_v33 = vpop.eup %1850 }
 0x195   :  { %v116_v34 = vsel %vm109_vm1, %v2030_v33, 0.0 }
 0x196   :  { %117 = vadd.xlane.f32.xlu0 %v116_v34  ;;  %v232_v34 = vld [vmem:[%s2635_s2 + $0x250] sm:$0xff]  ;;  %1695 = vmatpush1.bf16.msra.mxu1 %v1694_v7  ;;  %v1772_v7 = vpack.c.bf16 %v221_v63, %v213_v62  ;;  %v613_v62 = vld [vmem:[%s2637_s4 + $0x8] sm:$0xff] }
 0x197   :  { %v1714_v35 = vpack.c.bf16 %v232_v34, %v224_v32  ;;  %1729 = vmatprep.subr.bf16.mxu1 %v1728_v14  ;;  %v179_v32 = vld [vmem:[%s2635_s2 + $0xa8] sm:$0xff]  ;;  %v1742_v14 = vpack.c.bf16 %v218_v5, %v210_v3 }
 0x199   :  { %1715 = vmatpush1.bf16.msra.mxu0 %v1714_v35  ;;  %v187_v35 = vld [vmem:[%s2635_s2 + $0xe8] sm:$0xff] }
 0x19a   :  { %1717 = vmatprep.subr.bf16.mxu0 %v1716_v43  ;;  %v178_v43 = vld [vmem:[%s2635_s2 + $0xa0] sm:$0xff]  ;;  %v1732_v46 = vpack.c.bf16 %v187_v35, %v179_v32  ;;  %v252_v35 = vld [vmem:[%s2635_s2 + $0x2f0] sm:$0xff] }
 0x19b   :  { %v1734_v53 = vpack.c.bf16 %v186_v44, %v178_v43  ;;  %v266_v43 = vld [vmem:[%s2635_s2 + $0x360] sm:$0xff] }
 0x19d   :  { %1719 = vmatpush1.bf16.msra.mxu0 %v1718_v48  ;;  %v180_v48 = vld [vmem:[%s2635_s2 + $0xb0] sm:$0xff] }
 0x223   :  { %v118_v9 = vpop.xlane.xlu0 %117 }
 0x224   :  { %1852 = vrcp.f32 %v118_v9  ;;  %v280_v9 = vld [vmem:[%s2635_s2 + $0x3d0] sm:$0xff] }
 0x225   :  { %v1726_v10 = vpack.c.bf16 %v280_v9, %v272_v8  ;;  %v212_v8 = vld [vmem:[%s2635_s2 + $0x1b0] sm:$0xff] }
 0x226   :  { %v220_v9 = vld [vmem:[%s2635_s2 + $0x1f0] sm:$0xff] }
 0x227   :  { %v1774_v15 = vpack.c.bf16 %v220_v9, %v212_v8  ;;  %v288_v8 = vlaneseq }
 0x229   :  { %v2490_v9 = vshrl.u32 %v288_v8, 7 }
 0x22e   :  { %v1853_v47 = vpop.eup %1852 }
 0x22f   :  { %v2179_v49 = vmul.f32 %v1853_v47, %v2030_v33  ;;  %v265_v33 = vld [vmem:[%s2635_s2 + $0x358] sm:$0xff]  ;;  %v1764_v47 = vpack.c.bf16 %v189_v37, %v181_v36  ;;  %v259_v36 = vld [vmem:[%s2635_s2 + $0x328] sm:$0xff] }
 0x230   :  { %v1720_v56 = vpack.c.bf16 %v265_v33, %v257_v52  ;;  %v205_v52 = vld [vmem:[%s2635_s2 + $0x178] sm:$0xff]  ;;  %v267_v37 = vld [vmem:[%s2635_s2 + $0x368] sm:$0xff] }
 0x231   :  { %128 = vrot.lane.b32.xlu0 %v2179_v49, %s1921_s9  ;;  %122 = vrot.lane.b32.xlu1 %v2179_v49, %s1922_s10  ;;  %v1752_v44 = vpack.c.bf16 %v267_v37, %v259_v36  ;;  %v294_v37 = vsub.s32 1, %v2490_v9 }
 0x232   :  { %1721 = vmatprep.subr.bf16.mxu0 %v1720_v56  ;;  %v1736_v56 = vpack.c.bf16 %v203_v51, %v195_v50  ;;  %v283_v50 = vld [vmem:[%s2635_s2 + $0x3e8] sm:$0xff]  ;;  %v277_v51 = vld [vmem:[%s2635_s2 + $0x3b8] sm:$0xff] }
 0x233   :  { %1723 = vmatpush1.bf16.msra.mxu0 %v1722_v60  ;;  %v211_v60 = vld [vmem:[%s2635_s2 + $0x1a8] sm:$0xff] }
 0x234   :  { %1725 = vmatprep.subr.bf16.mxu0 %v1724_v6  ;;  %v1740_v6 = vpack.c.bf16 %v219_v61, %v211_v60  ;;  %v612_v61 = vld [vmem:[%s2637_s4] sm:$0xff] }
 0x235   :  { %125 = vrot.lane.b32.xlu1 %v2179_v49, %s1923_s27  ;;  %v2453_v63 = vpack.c.bf16 %v613_v62, %v612_v61 }
 0x237   :  { %1727 = vmatpush1.bf16.msra.mxu0 %v1726_v10  ;;  %v227_v10 = vld [vmem:[%s2635_s2 + $0x228] sm:$0xff] }
 0x238   :  { %1761 = vmatprep.subr.bf16.mxu0 %v1760_v16  ;;  %v226_v16 = vld [vmem:[%s2635_s2 + $0x220] sm:$0xff] }
 0x239   :  { %131 = vrot.lane.b32.xlu1 %v2179_v49, %s1924_s14 }
 0x23d   :  { %134 = vrot.lane.b32.xlu1 %v2179_v49, %s1925_s15 }
 0x241   :  { %137 = vrot.lane.b32.xlu1 %v2179_v49, %s1926_s16 }
 0x245   :  { %140 = vrot.lane.b32.xlu1 %v2179_v49, %s1927_s17 }
 0x2a3   :  { %v123_v17 = vpop.permute.xlu1 %122  ;;  %v129_v23 = vpop.permute.xlu0 %128 }
 0x2a4   :  { %v143_v21 = vsel %vm109_vm1, %v2179_v49, %v123_v17  ;;  %v188_v49 = vld [vmem:[%s2635_s2 + $0xf0] sm:$0xff]  ;;  %v234_v17 = vld [vmem:[%s2635_s2 + $0x260] sm:$0xff] }
 0x2a5   :  { %v1766_v33 = vpack.c.bf16 %v188_v49, %v180_v48  ;;  %v1746_v27 = vpack.c.bf16 %v234_v17, %v226_v16  ;;  %v268_v48 = vld [vmem:[%s2635_s2 + $0x370] sm:$0xff]  ;;  %v275_v49 = vld [vmem:[%s2635_s2 + $0x3a8] sm:$0xff] }
 0x2a6   :  { %v1756_v54 = vpack.c.bf16 %v283_v50, %v275_v49 }
 0x2a7   :  { %v126_v18 = vpop.permute.xlu1 %125 }
 0x2a8   :  { %v145_v22 = vsel %vm144_vm2, %v143_v21, %v126_v18  ;;  %v1744_v18 = vpack.c.bf16 %v235_v11, %v227_v10  ;;  %v236_v21 = vld [vmem:[%s2635_s2 + $0x270] sm:$0xff]  ;;  %v290_v10 = vsub.s32 0, %v2490_v9  ;;  %v2496_v11 = vld [vmem:[%s2638_s3] sm:$0xff] }
 0x2a9   :  { %v147_v25 = vsel %vm146_vm3, %v145_v22, %v129_v23  ;;  %v243_v22 = vld [vmem:[%s2635_s2 + $0x2a8] sm:$0xff] }
 0x2aa   :  { %v251_v23 = vld [vmem:[%s2635_s2 + $0x2e8] sm:$0xff]  ;;  %v291_v16 = vrot.slane %v2496_v11, %v290_v10 }
 0x2ab   :  { %v132_v19 = vpop.permute.xlu1 %131  ;;  %v1748_v31 = vpack.c.bf16 %v251_v23, %v243_v22 }
 0x2ac   :  { %v149_v29 = vsel %vm148_vm4, %v147_v25, %v132_v19  ;;  %v1776_v19 = vpack.c.bf16 %v237_v13, %v229_v12  ;;  %v253_v25 = vld [vmem:[%s2635_s2 + $0x2f8] sm:$0xff] }
 0x2af   :  { %v135_v20 = vpop.permute.xlu1 %134 }
 0x2b0   :  { %v151_v34 = vsel %vm150_vm5, %v149_v29, %v135_v20  ;;  %v228_v20 = vld [vmem:[%s2635_s2 + $0x230] sm:$0xff]  ;;  %v242_v29 = vld [vmem:[%s2635_s2 + $0x2a0] sm:$0xff] }
 0x2b1   :  { %v1778_v28 = vpack.c.bf16 %v236_v21, %v228_v20 }
 0x2b3   :  { %v138_v24 = vpop.permute.xlu1 %137 }
 0x2b4   :  { %v153_v38 = vsel %vm152_vm6, %v151_v34, %v138_v24  ;;  %v245_v24 = vld [vmem:[%s2635_s2 + $0x2b8] sm:$0xff]  ;;  %v244_v34 = vld [vmem:[%s2635_s2 + $0x2b0] sm:$0xff] }
 0x2b5   :  { %v1780_v32 = vpack.c.bf16 %v253_v25, %v245_v24 }
 0x2b7   :  { %v141_v39 = vpop.permute.xlu1 %140 }
 0x2b8   :  { %v155_v40 = vsel %vm154_vm7, %v153_v38, %v141_v39  ;;  %v261_v38 = vld [vmem:[%s2635_s2 + $0x338] sm:$0xff] }
 0x2b9   :  { %v2287_v45 = vmul.f32 %v155_v40, %v2025_v26  ;;  %v197_v26 = vld [vmem:[%s2635_s2 + $0x138] sm:$0xff]  ;;  %v1750_v40 = vpack.c.bf16 %v250_v30, %v242_v29 }
 0x2ba   :  { %v1768_v57 = vpack.c.bf16 %v205_v52, %v197_v26  ;;  %v269_v39 = vld [vmem:[%s2635_s2 + $0x378] sm:$0xff] }
 0x2bb   :  { %157 = vst [vmem:[%s2636_s5] sm:$0xff] %v2287_v45  ;;  %393 = vmatmul.mubr.f32.vlgmr.msra.gmra.mrb[0].mxu1 %v2287_v45  ;;  %464 = vmatmul.mubr.f32.vlgmr.msra.gmra.mrb[2].mxu0 %v2287_v45  ;;  %v285_v26 = vld [vmem:[%s2635_s2 + $0x3f8] sm:$0xff] }
 0x2bc   :  { %1731 = vmatpush1.bf16.msra.mxu1 %v1730_v41  ;;  %1763 = vmatpush1.bf16.msra.mxu0 %v1762_v42  ;;  %v1782_v41 = vpack.c.bf16 %v252_v35, %v244_v34  ;;  %v258_v42 = vld [vmem:[%s2635_s2 + $0x320] sm:$0xff]  ;;  %v1788_v55 = vpack.c.bf16 %v285_v26, %v277_v51 }
 0x2bd   :  { %1733 = vmatprep.subr.bf16.mxu1 %v1732_v46  ;;  %1765 = vmatprep.subr.bf16.mxu0 %v1764_v47  ;;  %v1784_v46 = vpack.c.bf16 %v269_v39, %v261_v38  ;;  %v260_v47 = vld [vmem:[%s2635_s2 + $0x330] sm:$0xff]  ;;  %v1754_v52 = vpack.c.bf16 %v266_v43, %v258_v42  ;;  %v295_v38 = vrot.slane %v2496_v11, %v294_v37 }
 0x2be   :  { %534 = vmatprep.mubr.f32.mxu1 %v1920_v4  ;;  %605 = vmatprep.mubr.f32.mxu0 %v1920_v4 }
 0x2c0   :  { %1735 = vmatpush1.bf16.msra.mxu1 %v1734_v53  ;;  %1767 = vmatpush1.bf16.msra.mxu0 %v1766_v33  ;;  %v1786_v53 = vpack.c.bf16 %v268_v48, %v260_v47  ;;  %v274_v33 = vld [vmem:[%s2635_s2 + $0x3a0] sm:$0xff] }
 0x2c1   :  { %1737 = vmatprep.subr.bf16.mxu1 %v1736_v56  ;;  %1769 = vmatprep.subr.bf16.mxu0 %v1768_v57  ;;  %v282_v56 = vld [vmem:[%s2635_s2 + $0x3e0] sm:$0xff]  ;;  %v276_v57 = vld [vmem:[%s2635_s2 + $0x3b0] sm:$0xff] }
 0x2c2   :  { %v1758_v59 = vpack.c.bf16 %v282_v56, %v274_v33  ;;  %v1790_v60 = vpack.c.bf16 %v284_v58, %v276_v57  ;;  %v298_v56 = vsub.s32 2, %v2490_v9 }
 0x2c4   :  { %1739 = vmatpush1.bf16.msra.mxu1 %v1738_v1  ;;  %1771 = vmatpush1.bf16.msra.mxu0 %v1770_v2  ;;  %v614_v1 = vld [vmem:[%s2637_s4 + $0x10] sm:$0xff]  ;;  %v615_v2 = vld [vmem:[%s2637_s4 + $0x18] sm:$0xff]  ;;  %v299_v57 = vrot.slane %v2496_v11, %v298_v56 }
 0x2c5   :  { %1741 = vmatprep.subr.bf16.mxu1 %v1740_v6  ;;  %1773 = vmatprep.subr.bf16.mxu0 %v1772_v7  ;;  %v2466_v3 = vpack.c.bf16 %v615_v2, %v614_v1 }
 0x2c8   :  { %1743 = vmatpush1.bf16.msra.mxu1 %v1742_v14  ;;  %1775 = vmatpush1.bf16.msra.mxu0 %v1774_v15 }
 0x2c9   :  { %1745 = vmatprep.subr.bf16.mxu1 %v1744_v18  ;;  %1777 = vmatprep.subr.bf16.mxu0 %v1776_v19 }
 0x2cc   :  { %1747 = vmatpush1.bf16.msra.mxu1 %v1746_v27  ;;  %1779 = vmatpush1.bf16.msra.mxu0 %v1778_v28 }
 0x2cd   :  { %1749 = vmatprep.subr.bf16.mxu1 %v1748_v31  ;;  %1781 = vmatprep.subr.bf16.mxu0 %v1780_v32 }
 0x2d0   :  { %1751 = vmatpush1.bf16.msra.mxu1 %v1750_v40  ;;  %1783 = vmatpush1.bf16.msra.mxu0 %v1782_v41 }
 0x2d1   :  { %1753 = vmatprep.subr.bf16.mxu1 %v1752_v44  ;;  %1785 = vmatprep.subr.bf16.mxu0 %v1784_v46 }
 0x2d4   :  { %1755 = vmatpush1.bf16.msra.mxu1 %v1754_v52  ;;  %1787 = vmatpush1.bf16.msra.mxu0 %v1786_v53 }
 0x2d5   :  { %1757 = vmatprep.subr.bf16.mxu1 %v1756_v54  ;;  %1789 = vmatprep.subr.bf16.mxu0 %v1788_v55 }
 0x2d8   :  { %1759 = vmatpush1.bf16.msra.mxu1 %v1758_v59  ;;  %1791 = vmatpush1.bf16.msra.mxu0 %v1790_v60 }
 0x2d9   :  { %1792 = vmatprep.subr.bf16.mxu1 %v1918_v0  ;;  %1816 = vmatprep.subr.bf16.mxu0 %v1918_v0 }
 0x2db   :  { %535 = vmatmul.mubr.f32.vlgmr.msra.gmra.mrb[2].mxu1 %v2287_v45  ;;  %606 = vmatmul.mubr.f32.vlgmr.msra.gmra.mrb[4].mxu0 %v2287_v45 }
 0x2dc   :  { %1794 = vmatpush3.bf16.msra.mxu1 %v2453_v63  ;;  %1560 = vmatprep.mubr.msk.f32.mxu1 %vm1919_vm0, %v1920_v4 }
 0x2dd   :  { %1795 = vmatprep.subr.bf16.mxu1 %v1918_v0  ;;  %1818 = vmatpush3.bf16.msra.mxu0 %v2453_v63 }
 0x2de   :  { %1819 = vmatprep.subr.bf16.mxu0 %v1918_v0  ;;  %1604 = vmatprep.mubr.msk.f32.mxu0 %vm1919_vm0, %v1920_v4 }
 0x2e0   :  { %1797 = vmatpush3.bf16.msra.mxu1 %v2466_v3 }
 0x2e1   :  { %1798 = vmatprep.subr.bf16.mxu1 %v1918_v0  ;;  %1821 = vmatpush3.bf16.msra.mxu0 %v2466_v3 }
 0x2e2   :  { %1828 = vmatprep.subr.bf16.mxu0 %v1918_v0 }
 0x2e3   :  { %1561 = vmatmul.mubr.f32.vlgmr.msra.gmra.mrb[4].mxu1 %v1920_v4 }
 0x2e4   :  { %1800 = vmatpush3.bf16.msra.mxu1 %v2453_v63  ;;  %1571 = vmatprep.mubr.msk.f32.mxu1 %vm1919_vm0, %v1920_v4 }
 0x2e5   :  { %1801 = vmatprep.subr.bf16.mxu1 %v1918_v0 }
 0x2e8   :  { %1803 = vmatpush3.bf16.msra.mxu1 %v2466_v3 }
 0x2e9   :  { %1804 = vmatprep.subr.bf16.mxu1 %v1918_v0 }
 0x38e   :  { %v394_v45 = vpop.f32.mrb[0].mxu1  ;;  %v2486_v5 = vpop.f32.mrb[2].mxu0 }
 0x38f   :  { %v396_v6 = vpop.f32.mrb[1].mxu1  ;;  %v2488_v7 = vpop.f32.mrb[3].mxu0  ;;  %v395_v17 = vadd.f32 %v394_v45, %v291_v16  ;;  %v466_v58 = vadd.f32 %v2486_v5, %v299_v57 }
 0x390   :  { %v397_v39 = vadd.f32 %v396_v6, %v295_v38 }
 0x3ae   :  { %v2498_v12 = vpop.f32.mrb[2].mxu1  ;;  %v2500_v13 = vpop.f32.mrb[4].mxu0 }
 0x3af   :  { %v2502_v14 = vpop.f32.mrb[3].mxu1  ;;  %v2504_v15 = vpop.f32.mrb[5].mxu0 }
 0x3b6   :  { %v685_v18 = vpop.f32.mrb[4].mxu1 }
 0x3b7   :  { %v689_v19 = vadd.f32 %v685_v18, %v395_v17  ;;  %v1562_v20 = vpop.f32.mrb[5].mxu1 }
 0x3b9   :  { %1854 = vtanh.f32 %v689_v19  ;;  %v1445_v22 = vmul.f32 -1.442695, %v689_v19 }
 0x3bb   :  { %1856 = vpow2.f32 %v1445_v22  ;;  %v302_v22 = vsub.s32 3, %v2490_v9 }
 0x3c3   :  { %v1855_v21 = vpop.eup %1854 }
 0x3c4   :  { %699 = vrot.lane.b32.xlu1 %v1855_v21, %s1923_s27 }
 0x3c5   :  { %v1857_v23 = vpop.eup %1856 }
 0x3c6   :  { %v693_v24 = vadd.f32 1.0, %v1857_v23  ;;  %v303_v23 = vrot.slane %v2496_v11, %v302_v22 }
 0x3c8   :  { %1858 = vrcp.f32 %v693_v24  ;;  %v468_v24 = vadd.f32 %v2488_v7, %v303_v23 }
 0x3d2   :  { %v1859_v25 = vpop.eup %1858 }
 0x3d3   :  { %v697_v29 = vmul.f32 0.0, %v1859_v25 }
 0x436   :  { %v700_v27 = vpop.permute.xlu1 %699 }
 0x437   :  { %v702_v28 = vmul.f32 %v1859_v25, %v700_v27 }
 0x439   :  { %704 = vrot.lane.b32.xlu1 %v702_v28, %s1923_s27 }
 0x4ab   :  { %v705_v30 = vpop.permute.xlu1 %704 }
 0x4ac   :  { %v707_v31 = vadd.f32 %v705_v30, %v697_v29 }
 0x4ae   :  { %1860 = vtanh.f32 %v707_v31 }
 0x4b8   :  { %v1861_v32 = vpop.eup %1860 }
 0x4b9   :  { %710 = vrot.lane.b32.xlu0 %v1861_v32, %s1923_s27 }
 0x52b   :  { %v711_v34 = vpop.permute.xlu0 %710 }
 0x52c   :  { %v713_v35 = vmul.f32 %v1859_v25, %v711_v34 }
 0x52e   :  { %715 = vrot.lane.b32.xlu1 %v713_v35, %s1924_s14 }
 0x5a0   :  { %v2511_v36 = vpop.permute.xlu1 %715 }
 0x5a1   :  { %1572 = vmatmul.mubr.msk.f32.vlgmr.msra.gmra.mrb[6].mxu1 %vm144_vm2, %v2511_v36 }
 0x5a2   :  { %1806 = vmatpush3.bf16.msra.mxu1 %v2453_v63  ;;  %1582 = vmatprep.mubr.msk.f32.mxu1 %vm1919_vm0, %v1920_v4 }
 0x5a3   :  { %1807 = vmatprep.subr.bf16.mxu1 %v1918_v0 }
 0x5a6   :  { %1809 = vmatpush3.bf16.msra.mxu1 %v2466_v3 }
 0x5a7   :  { %1810 = vmatprep.subr.bf16.mxu1 %v1918_v0 }
 0x674   :  { %v785_v40 = vpop.f32.mrb[6].mxu1 }
 0x675   :  { %v789_v41 = vadd.f32 %v785_v40, %v397_v39  ;;  %v1573_v42 = vpop.f32.mrb[7].mxu1 }
 0x677   :  { %1862 = vtanh.f32 %v789_v41  ;;  %v1447_v44 = vmul.f32 -1.442695, %v789_v41 }
 0x679   :  { %1864 = vpow2.f32 %v1447_v44  ;;  %v306_v44 = vsub.s32 4, %v2490_v9 }
 0x681   :  { %v1863_v43 = vpop.eup %1862 }
 0x682   :  { %799 = vrot.lane.b32.xlu0 %v1863_v43, %s1923_s27 }
 0x683   :  { %v1865_v46 = vpop.eup %1864 }
 0x684   :  { %v793_v47 = vadd.f32 1.0, %v1865_v46  ;;  %v307_v46 = vrot.slane %v2496_v11, %v306_v44 }
 0x686   :  { %1866 = vrcp.f32 %v793_v47  ;;  %v537_v47 = vadd.f32 %v2498_v12, %v307_v46 }
 0x690   :  { %v1867_v48 = vpop.eup %1866 }
 0x691   :  { %v797_v51 = vmul.f32 %v1867_v48, %v707_v31 }
 0x6f4   :  { %v800_v49 = vpop.permute.xlu0 %799 }
 0x6f5   :  { %v802_v50 = vmul.f32 %v1867_v48, %v800_v49 }
 0x6f7   :  { %804 = vrot.lane.b32.xlu1 %v802_v50, %s1923_s27 }
 0x769   :  { %v805_v26 = vpop.permute.xlu1 %804 }
 0x76a   :  { %v807_v52 = vadd.f32 %v805_v26, %v797_v51 }
 0x76c   :  { %1868 = vtanh.f32 %v807_v52 }
 0x776   :  { %v1869_v53 = vpop.eup %1868 }
 0x777   :  { %810 = vrot.lane.b32.xlu0 %v1869_v53, %s1923_s27 }
 0x7e9   :  { %v811_v33 = vpop.permute.xlu0 %810 }
 0x7ea   :  { %v2526_v54 = vmul.f32 %v1867_v48, %v811_v33 }
 0x7ec   :  { %815 = vrot.lane.b32.xlu1 %v2526_v54, %s1924_s14 }
 0x85e   :  { %v816_v55 = vpop.permute.xlu1 %815 }
 0x85f   :  { %1583 = vmatmul.mubr.msk.f32.vlgmr.msra.gmra.mrb[8].mxu1 %vm144_vm2, %v816_v55 }
 0x860   :  { %1812 = vmatpush3.bf16.msra.mxu1 %v2453_v63  ;;  %1593 = vmatprep.mubr.msk.f32.mxu1 %vm1919_vm0, %v1920_v4 }
 0x861   :  { %1813 = vmatprep.subr.bf16.mxu1 %v1918_v0 }
 0x864   :  { %1815 = vmatpush3.bf16.msra.mxu1 %v2466_v3 }
 0x865   :  { %1822 = vmatprep.subr.bf16.mxu1 %v1918_v0 }
 0x932   :  { %v885_v59 = vpop.f32.mrb[8].mxu1 }
 0x933   :  { %v889_v60 = vadd.f32 %v885_v59, %v466_v58  ;;  %v1584_v61 = vpop.f32.mrb[9].mxu1 }
 0x935   :  { %1870 = vtanh.f32 %v889_v60  ;;  %v1449_v1 = vmul.f32 -1.442695, %v889_v60 }
 0x937   :  { %1872 = vpow2.f32 %v1449_v1  ;;  %v310_v1 = vsub.s32 5, %v2490_v9 }
 0x93f   :  { %v1871_v62 = vpop.eup %1870 }
 0x940   :  { %899 = vrot.lane.b32.xlu0 %v1871_v62, %s1923_s27 }
 0x941   :  { %v1873_v2 = vpop.eup %1872 }
 0x942   :  { %v893_v45 = vadd.f32 1.0, %v1873_v2  ;;  %v311_v2 = vrot.slane %v2496_v11, %v310_v1 }
 0x944   :  { %1874 = vrcp.f32 %v893_v45  ;;  %v539_v45 = vadd.f32 %v2502_v14, %v311_v2 }
 0x94e   :  { %v1875_v6 = vpop.eup %1874 }
 0x94f   :  { %v897_v16 = vmul.f32 %v1875_v6, %v807_v52 }
 0x9b2   :  { %v900_v8 = vpop.permute.xlu0 %899 }
 0x9b3   :  { %v902_v10 = vmul.f32 %v1875_v6, %v900_v8 }
 0x9b5   :  { %904 = vrot.lane.b32.xlu1 %v902_v10, %s1923_s27 }
 0xa27   :  { %v905_v17 = vpop.permute.xlu1 %904 }
 0xa28   :  { %v907_v5 = vadd.f32 %v905_v17, %v897_v16 }
 0xa2a   :  { %1876 = vtanh.f32 %v907_v5 }
 0xa34   :  { %v1877_v18 = vpop.eup %1876 }
 0xa35   :  { %910 = vrot.lane.b32.xlu0 %v1877_v18, %s1923_s27 }
 0xaa7   :  { %v911_v19 = vpop.permute.xlu0 %910 }
 0xaa8   :  { %v2543_v20 = vmul.f32 %v1875_v6, %v911_v19 }
 0xaaa   :  { %915 = vrot.lane.b32.xlu1 %v2543_v20, %s1924_s14 }
 0xb1c   :  { %v916_v21 = vpop.permute.xlu1 %915 }
 0xb1d   :  { %1594 = vmatmul.mubr.msk.f32.vlgmr.msra.gmra.mrb[10].mxu1 %vm144_vm2, %v916_v21 }
 0xb1e   :  { %1824 = vmatpush3.bf16.msra.mxu1 %v2453_v63  ;;  %1615 = vmatprep.mubr.msk.f32.mxu1 %vm1919_vm0, %v1920_v4 }
 0xb1f   :  { %1825 = vmatprep.subr.bf16.mxu1 %v1918_v0 }
 0xb22   :  { %1827 = vmatpush3.bf16.msra.mxu1 %v2466_v3 }
 0xb23   :  { %1834 = vmatprep.subr.bf16.mxu1 %v1918_v0 }
 0xbf0   :  { %v985_v25 = vpop.f32.mrb[10].mxu1 }
 0xbf1   :  { %v989_v27 = vadd.f32 %v985_v25, %v468_v24  ;;  %v1595_v28 = vpop.f32.mrb[11].mxu1  ;;  %v314_v25 = vsub.s32 6, %v2490_v9 }
 0xbf3   :  { %1878 = vtanh.f32 %v989_v27  ;;  %v1451_v30 = vmul.f32 -1.442695, %v989_v27  ;;  %v315_v27 = vrot.slane %v2496_v11, %v314_v25 }
 0xbf5   :  { %1880 = vpow2.f32 %v1451_v30  ;;  %v608_v28 = vadd.f32 %v2500_v13, %v315_v27 }
 0xbfd   :  { %v1879_v29 = vpop.eup %1878 }
 0xbfe   :  { %999 = vrot.lane.b32.xlu0 %v1879_v29, %s1923_s27 }
 0xbff   :  { %v1881_v31 = vpop.eup %1880 }
 0xc00   :  { %v993_v32 = vadd.f32 1.0, %v1881_v31 }
 0xc02   :  { %1882 = vrcp.f32 %v993_v32 }
 0xc0c   :  { %v1883_v34 = vpop.eup %1882 }
 0xc0d   :  { %v997_v38 = vmul.f32 %v1883_v34, %v907_v5 }
 0xc70   :  { %v1000_v35 = vpop.permute.xlu0 %999 }
 0xc71   :  { %v1002_v37 = vmul.f32 %v1883_v34, %v1000_v35 }
 0xc73   :  { %1004 = vrot.lane.b32.xlu1 %v1002_v37, %s1923_s27 }
 0xce5   :  { %v1005_v39 = vpop.permute.xlu1 %1004 }
 0xce6   :  { %v1007_v7 = vadd.f32 %v1005_v39, %v997_v38 }
 0xce8   :  { %1884 = vtanh.f32 %v1007_v7 }
 0xcf2   :  { %v1885_v40 = vpop.eup %1884 }
 0xcf3   :  { %1010 = vrot.lane.b32.xlu0 %v1885_v40, %s1923_s27 }
 0xd65   :  { %v1011_v41 = vpop.permute.xlu0 %1010 }
 0xd66   :  { %v2560_v42 = vmul.f32 %v1883_v34, %v1011_v41 }
 0xd68   :  { %1015 = vrot.lane.b32.xlu1 %v2560_v42, %s1924_s14 }
 0xdda   :  { %v1016_v43 = vpop.permute.xlu1 %1015 }
 0xddb   :  { %1605 = vmatmul.mubr.msk.f32.vlgmr.msra.gmra.mrb[6].mxu0 %vm144_vm2, %v1016_v43 }
 0xddc   :  { %1830 = vmatpush3.bf16.msra.mxu0 %v2453_v63  ;;  %1626 = vmatprep.mubr.msk.f32.mxu0 %vm1919_vm0, %v1920_v4 }
 0xddd   :  { %1831 = vmatprep.subr.bf16.mxu0 %v1918_v0 }
 0xde0   :  { %1833 = vmatpush3.bf16.msra.mxu0 %v2466_v3 }
 0xeae   :  { %v1085_v48 = vpop.f32.mrb[6].mxu0 }
 0xeaf   :  { %v1089_v49 = vadd.f32 %v1085_v48, %v537_v47  ;;  %v1606_v50 = vpop.f32.mrb[7].mxu0  ;;  %v318_v48 = vsub.s32 7, %v2490_v9 }
 0xeb1   :  { %1886 = vtanh.f32 %v1089_v49  ;;  %v1453_v26 = vmul.f32 -1.442695, %v1089_v49  ;;  %v319_v49 = vrot.slane %v2496_v11, %v318_v48 }
 0xeb3   :  { %1888 = vpow2.f32 %v1453_v26  ;;  %v610_v50 = vadd.f32 %v2504_v15, %v319_v49 }
 0xebb   :  { %v1887_v51 = vpop.eup %1886 }
 0xebc   :  { %1099 = vrot.lane.b32.xlu0 %v1887_v51, %s1923_s27 }
 0xebd   :  { %v1889_v52 = vpop.eup %1888 }
 0xebe   :  { %v1093_v53 = vadd.f32 1.0, %v1889_v52 }
 0xec0   :  { %1890 = vrcp.f32 %v1093_v53 }
 0xeca   :  { %v1891_v33 = vpop.eup %1890 }
 0xecb   :  { %v1097_v57 = vmul.f32 %v1891_v33, %v1007_v7 }
 0xf2e   :  { %v1100_v55 = vpop.permute.xlu0 %1099 }
 0xf2f   :  { %v1102_v56 = vmul.f32 %v1891_v33, %v1100_v55 }
 0xf31   :  { %1104 = vrot.lane.b32.xlu1 %v1102_v56, %s1923_s27 }
 0xfa3   :  { %v1105_v58 = vpop.permute.xlu1 %1104 }
 0xfa4   :  { %v1107_v12 = vadd.f32 %v1105_v58, %v1097_v57 }
 0xfa6   :  { %1892 = vtanh.f32 %v1107_v12 }
 0xfb0   :  { %v1893_v59 = vpop.eup %1892 }
 0xfb1   :  { %1110 = vrot.lane.b32.xlu0 %v1893_v59, %s1923_s27 }
0x1023   :  { %v1111_v60 = vpop.permute.xlu0 %1110 }
0x1024   :  { %v1113_v61 = vmul.f32 %v1891_v33, %v1111_v60 }
0x1026   :  { %1115 = vrot.lane.b32.xlu1 %v1113_v61, %s1924_s14 }
0x1098   :  { %v2577_v62 = vpop.permute.xlu1 %1115 }
0x1099   :  { %1616 = vmatmul.mubr.msk.f32.vlgmr.msra.gmra.mrb[12].mxu1 %vm144_vm2, %v2577_v62 }
0x109a   :  { %1836 = vmatpush3.bf16.msra.mxu1 %v2453_v63  ;;  %1637 = vmatprep.mubr.msk.f32.mxu1 %vm1919_vm0, %v1920_v4 }
0x109b   :  { %1837 = vmatprep.subr.bf16.mxu1 %v1918_v0 }
0x109e   :  { %1839 = vmatpush3.bf16.msra.mxu1 %v2466_v3 }
0x116c   :  { %v1185_v6 = vpop.f32.mrb[12].mxu1 }
0x116d   :  { %v1189_v8 = vadd.f32 %v1185_v6, %v539_v45  ;;  %v1617_v10 = vpop.f32.mrb[13].mxu1 }
0x116f   :  { %1894 = vtanh.f32 %v1189_v8  ;;  %v1455_v63 = vmul.f32 -1.442695, %v1189_v8 }
0x1171   :  { %1896 = vpow2.f32 %v1455_v63 }
0x1179   :  { %v1895_v16 = vpop.eup %1894 }
0x117a   :  { %1199 = vrot.lane.b32.xlu0 %v1895_v16, %s1923_s27 }
0x117b   :  { %v1897_v4 = vpop.eup %1896 }
0x117c   :  { %v1193_v17 = vadd.f32 1.0, %v1897_v4 }
0x117e   :  { %1898 = vrcp.f32 %v1193_v17 }
0x1188   :  { %v1899_v0 = vpop.eup %1898 }
0x1189   :  { %v1197_v18 = vmul.f32 %v1899_v0, %v1107_v12 }
0x11ec   :  { %v1200_v3 = vpop.permute.xlu0 %1199 }
0x11ed   :  { %v1202_v5 = vmul.f32 %v1899_v0, %v1200_v3 }
0x11ef   :  { %1204 = vrot.lane.b32.xlu1 %v1202_v5, %s1923_s27 }
0x1261   :  { %v1205_v19 = vpop.permute.xlu1 %1204 }
0x1262   :  { %v1207_v14 = vadd.f32 %v1205_v19, %v1197_v18 }
0x1264   :  { %1900 = vtanh.f32 %v1207_v14 }
0x126e   :  { %v1901_v21 = vpop.eup %1900 }
0x126f   :  { %1210 = vrot.lane.b32.xlu0 %v1901_v21, %s1923_s27 }
0x12e1   :  { %v1211_v22 = vpop.permute.xlu0 %1210 }
0x12e2   :  { %v2592_v23 = vmul.f32 %v1899_v0, %v1211_v22 }
0x12e4   :  { %1215 = vrot.lane.b32.xlu1 %v2592_v23, %s1924_s14 }
0x1356   :  { %v1216_v24 = vpop.permute.xlu1 %1215 }
0x1357   :  { %1627 = vmatmul.mubr.msk.f32.vlgmr.msra.gmra.mrb[8].mxu0 %vm144_vm2, %v1216_v24 }
0x142a   :  { %v1285_v29 = vpop.f32.mrb[8].mxu0 }
0x142b   :  { %v1289_v30 = vadd.f32 %v1285_v29, %v608_v28  ;;  %v1628_v31 = vpop.f32.mrb[9].mxu0 }
0x142d   :  { %1902 = vtanh.f32 %v1289_v30  ;;  %v1457_v34 = vmul.f32 -1.442695, %v1289_v30 }
0x142f   :  { %1904 = vpow2.f32 %v1457_v34 }
0x1437   :  { %v1903_v32 = vpop.eup %1902 }
0x1438   :  { %1299 = vrot.lane.b32.xlu0 %v1903_v32, %s1923_s27 }
0x1439   :  { %v1905_v35 = vpop.eup %1904 }
0x143a   :  { %v1293_v37 = vadd.f32 1.0, %v1905_v35 }
0x143c   :  { %1906 = vrcp.f32 %v1293_v37 }
0x1446   :  { %v1907_v38 = vpop.eup %1906 }
0x1447   :  { %v1297_v40 = vmul.f32 %v1907_v38, %v1207_v14 }
0x14aa   :  { %v1300_v39 = vpop.permute.xlu0 %1299 }
0x14ab   :  { %v1302_v7 = vmul.f32 %v1907_v38, %v1300_v39 }
0x14ad   :  { %1304 = vrot.lane.b32.xlu1 %v1302_v7, %s1923_s27 }
0x151f   :  { %v1305_v41 = vpop.permute.xlu1 %1304 }
0x1520   :  { %v1307_v13 = vadd.f32 %v1305_v41, %v1297_v40 }
0x1522   :  { %1908 = vtanh.f32 %v1307_v13 }
0x152c   :  { %v1909_v43 = vpop.eup %1908 }
0x152d   :  { %1310 = vrot.lane.b32.xlu0 %v1909_v43, %s1923_s27 }
0x159f   :  { %v1311_v44 = vpop.permute.xlu0 %1310 }
0x15a0   :  { %v1313_v46 = vmul.f32 %v1907_v38, %v1311_v44 }
0x15a2   :  { %1315 = vrot.lane.b32.xlu1 %v1313_v46, %s1924_s14 }
0x1614   :  { %v1316_v47 = vpop.permute.xlu1 %1315 }
0x1615   :  { %1638 = vmatmul.mubr.msk.f32.vlgmr.msra.gmra.mrb[14].mxu1 %vm144_vm2, %v1316_v47 }
0x16e8   :  { %v1385_v51 = vpop.f32.mrb[14].mxu1 }
0x16e9   :  { %v1389_v26 = vadd.f32 %v1385_v51, %v610_v50  ;;  %v1639_v52 = vpop.f32.mrb[15].mxu1 }
0x16eb   :  { %1910 = vtanh.f32 %v1389_v26  ;;  %v1459_v33 = vmul.f32 -1.442695, %v1389_v26 }
0x16ed   :  { %1912 = vpow2.f32 %v1459_v33 }
0x16f5   :  { %v1911_v53 = vpop.eup %1910 }
0x16f6   :  { %1399 = vrot.lane.b32.xlu0 %v1911_v53, %s1923_s27 }
0x16f7   :  { %v1913_v55 = vpop.eup %1912 }
0x16f8   :  { %v1393_v56 = vadd.f32 1.0, %v1913_v55 }
0x16fa   :  { %1914 = vrcp.f32 %v1393_v56 }
0x1704   :  { %v1915_v57 = vpop.eup %1914 }
0x1705   :  { %v1397_v9 = vmul.f32 %v1915_v57, %v1307_v13 }
0x1768   :  { %v1400_v58 = vpop.permute.xlu0 %1399 }
0x1769   :  { %v1402_v12 = vmul.f32 %v1915_v57, %v1400_v58 }
0x176b   :  { %1404 = vrot.lane.b32.xlu1 %v1402_v12, %s1923_s27 }
0x176f   :  { %1415 = vrot.lane.b32.xlu1 %v2526_v54, %s1926_s16 }
0x1773   :  { %1418 = vrot.lane.b32.xlu1 %v2560_v42, %s1923_s27 }
0x17dd   :  { %v1405_v11 = vpop.permute.xlu1 %1404 }
0x17de   :  { %v1407_v15 = vadd.f32 %v1405_v11, %v1397_v9 }
0x17e0   :  { %1916 = vtanh.f32 %v1407_v15 }
0x17e1   :  { %v1416_v59 = vpop.permute.xlu1 %1415 }
0x17e2   :  { %v1429_v60 = vsel %vm144_vm2, %v2511_v36, %v1416_v59 }
0x17e3   :  { %v1430_v61 = vsel %vm148_vm4, %v1429_v60, %v2543_v20 }
0x17e5   :  { %v1419_v1 = vpop.permute.xlu1 %1418 }
0x17e6   :  { %v1431_v2 = vsel %vm152_vm6, %v1430_v61, %v1419_v1 }
0x17e7   :  { %1435 = vst [vmem:[%s2639_s6] sm:$0xff] %v1431_v2 }
0x17ea   :  { %v1917_v54 = vpop.eup %1916 }
0x17eb   :  { %1410 = vrot.lane.b32.xlu0 %v1917_v54, %s1923_s27 }
0x17ef   :  { %1422 = vrot.lane.b32.xlu0 %v2592_v23, %s1926_s16 }
0x185d   :  { %v1411_v42 = vpop.permute.xlu0 %1410 }
0x185e   :  { %v1413_v45 = vmul.f32 %v1915_v57, %v1411_v42 }
0x1860   :  { %1426 = vrot.lane.b32.xlu0 %v1413_v45, %s1923_s27 }
0x1861   :  { %v1423_v36 = vpop.permute.xlu0 %1422 }
0x1862   :  { %v1432_v20 = vsel %vm144_vm2, %v2577_v62, %v1423_v36 }
0x1863   :  { %v1433_v6 = vsel %vm148_vm4, %v1432_v20, %v1313_v46 }
0x18d2   :  { %v1427_v8 = vpop.permute.xlu0 %1426 }
0x18d3   :  { %v1434_v10 = vsel %vm152_vm6, %v1433_v6, %v1427_v8 }
0x18d4   :  { %1436 = vst [vmem:[%s2639_s6 + $0x8] sm:$0xff] %v1434_v10 }

</bundles_post_ra>
